<compile_context>
chip_gen: v7x
topology: tpu7x:2x2x1
jax: 0.10.0
libtpu: 0.0.40
codegen_flags: <defaults>
</compile_context>

<pallas_src>
import jax
import jax.numpy as jnp
from jax.experimental import pallas as pl
from jax.experimental.pallas import tpu as pltpu

# ---------------- configuration (small shapes implied by the module) ----------------
SEQ = 8            # sequence length (time steps)
BATCH = 2          # batch size
D_IN = 16          # raw input feature dim fed to the spiralnet front-end
EMBED = 32         # embedding_dim (== GRU hidden size)
NUM_CLASSES = 5    # nr_of_classes
N_SPIRAL = 4       # nr_spiralnet_layers
N_GRU = 2          # nr_rnn_layers
LN_EPS = 1e-5      # nn.LayerNorm default eps

BP = 8             # padded batch (one full sublane group per timestep)
PAD_COLS = 128     # lane-dense column width for packed params / logits output

# Row offsets inside the packed weight matrix W. All are multiples of 8, so every
# slice taken inside the kernel is tile-granular along the sublane dim.
_SW_ROWS = (0, 16, 48, 80)            # spiralnet layer weights
_SW_IN = (D_IN, EMBED, EMBED, EMBED)  # their input dims
_FC_ROW = 112                         # classifier weight (EMBED rows, 128 cols padded)
_WIH_ROW = 144                        # GRU input-to-hidden weight of layer l at +32*l
_WHH_ROW = 208                        # GRU hidden-to-hidden weight of layer l at +32*l
_W_ROWS = 272

# Row indices inside the packed vector matrix V.
_V_SB = 0          # rows 0..3 : spiralnet biases
_V_LNG = 4         # LayerNorm gamma
_V_LNB = 5         # LayerNorm beta
_V_FCB = 6         # classifier bias (zero-padded to 128)
_V_BI = 8          # rows 8..9 : GRU combined input bias per layer (bih + bhh for r,z)
_V_BHN = 10        # rows 10..11: GRU hidden bias of the n gate per layer
_V_ROWS = 16


def _erf(x):
    # Abramowitz & Stegun 7.1.26 rational approximation of erf (max abs err ~1.5e-7,
    # i.e. exact to f32 precision) so nn.GELU()'s exact erf semantics are reproduced
    # with ops that are guaranteed to lower on the TPU VPU/EUP.
    p = 0.3275911
    a1, a2, a3, a4, a5 = 0.254829592, -0.284496736, 1.421413741, -1.453152027, 1.061405429
    ax = jnp.abs(x)
    t = 1.0 / (1.0 + p * ax)
    poly = ((((a5 * t + a4) * t + a3) * t + a2) * t + a1) * t
    y = 1.0 - poly * jnp.exp(-(ax * ax))
    return jnp.where(x >= 0, y, -y)


def _gelu_exact(x):
    # PyTorch nn.GELU() default: 0.5 * x * (1 + erf(x / sqrt(2)))
    return 0.5 * x * (1.0 + _erf(x * 0.7071067811865476))


def classifier_kernel(x_ref, w_ref, v_ref, out_ref):
    H = EMBED
    H2 = 2 * H
    H3 = 3 * H

    x = x_ref[...]                              # (SEQ*BP, D_IN), time-major, batch-padded
    vp = v_ref[...]                             # (16, 128) packed vectors (one tiny load)

    # --- spiralnet front-end ---
    # TODO(synk): instantiate_spiralnet() source is not provided in the module; it is
    # approximated here as a pointwise MLP of nr_spiralnet_layers Linear layers
    # (ReLU between layers) mapping D_IN -> embedding_dim.
    h = x
    for i in range(N_SPIRAL):
        w = w_ref[_SW_ROWS[i]:_SW_ROWS[i] + _SW_IN[i], :H]      # tile-aligned slice
        b = vp[_V_SB + i:_V_SB + i + 1, :H]
        h = jnp.dot(h, w, preferred_element_type=jnp.float32) + b
        if i < N_SPIRAL - 1:
            h = jnp.maximum(h, 0.0)

    # --- LayerNorm over the embedding dim (biased variance, eps=1e-5, affine) ---
    mean = jnp.mean(h, axis=-1, keepdims=True)
    diff = h - mean
    var = jnp.mean(diff * diff, axis=-1, keepdims=True)
    h = diff * jax.lax.rsqrt(var + LN_EPS)
    h = h * vp[_V_LNG:_V_LNG + 1, :H] + vp[_V_LNB:_V_LNB + 1, :H]    # (SEQ*BP, H)

    # --- stacked GRU (batch_first=False), layer-by-layer; PyTorch gate order r,z,n ---
    # Input-to-hidden matmul batched over all timesteps; only the hidden-to-hidden
    # matmul + gate math sit on the serial recurrence chain.
    h_state = jnp.zeros((BP, H), jnp.float32)
    for l in range(N_GRU):
        wih = w_ref[_WIH_ROW + 32 * l:_WIH_ROW + 32 * (l + 1), :H3]   # (H, 3H)
        whh = w_ref[_WHH_ROW + 32 * l:_WHH_ROW + 32 * (l + 1), :H3]   # (H, 3H)
        bi = vp[_V_BI + l:_V_BI + l + 1, :H3]       # bih (+ bhh pre-folded for r,z)
        bhn = vp[_V_BHN + l:_V_BHN + l + 1, :H]     # bhh for the n gate only

        gi_all = jnp.dot(h, wih, preferred_element_type=jnp.float32) + bi   # (SEQ*BP, 3H)

        h_state = jnp.zeros((BP, H), jnp.float32)
        outs = []
        for t in range(SEQ):
            gi = gi_all[t * BP:(t + 1) * BP, :]     # sublane-aligned (8, 3H) slice
            gh = jnp.dot(h_state, whh, preferred_element_type=jnp.float32)  # (8, 3H)
            rz = jax.nn.sigmoid(gi[:, :H2] + gh[:, :H2])       # fused r/z sigmoid
            r = rz[:, :H]
            z = rz[:, H:H2]
            n = jnp.tanh(gi[:, H2:] + r * (gh[:, H2:] + bhn))
            h_state = (1.0 - z) * n + z * h_state
            if l < N_GRU - 1:
                outs.append(h_state)
        if l < N_GRU - 1:
            h = jnp.concatenate(outs, axis=0)       # (SEQ*BP, H) input for next layer

    # --- GELU(last timestep, top GRU layer) -> Linear classifier (logits, no softmax) ---
    feat = _gelu_exact(h_state)                                     # (BP, H)
    logits = jnp.dot(feat, w_ref[_FC_ROW:_FC_ROW + H, :],
                     preferred_element_type=jnp.float32) + vp[_V_FCB:_V_FCB + 1, :]
    out_ref[...] = logits                                            # full (BP, 128) store


def pack_params(params):
    """Pack all module parameters into two f32 arrays (row offsets multiples of 8)."""
    H = EMBED
    W = jnp.zeros((_W_ROWS, PAD_COLS), jnp.float32)

    def put(mat, r0, arr):
        return mat.at[r0:r0 + arr.shape[0], :arr.shape[1]].set(arr)

    for i in range(N_SPIRAL):
        W = put(W, _SW_ROWS[i], params[f"sw{i}"])
    W = put(W, _FC_ROW, params["fc_w"])                 # (H, NUM_CLASSES) zero-padded cols
    for l in range(N_GRU):
        W = put(W, _WIH_ROW + 32 * l, params["gru_wih"][l])
        W = put(W, _WHH_ROW + 32 * l, params["gru_whh"][l])

    V = jnp.zeros((_V_ROWS, PAD_COLS), jnp.float32)
    for i in range(N_SPIRAL):
        V = V.at[_V_SB + i, :H].set(params[f"sb{i}"])
    V = V.at[_V_LNG, :H].set(params["ln_g"])
    V = V.at[_V_LNB, :H].set(params["ln_b"])
    V = V.at[_V_FCB, :NUM_CLASSES].set(params["fc_b"])
    for l in range(N_GRU):
        bih = params["gru_bih"][l]
        bhh = params["gru_bhh"][l]
        # fold the hidden r/z biases into the (batched, off-critical-path) input bias
        comb = jnp.concatenate([bih[:2 * H] + bhh[:2 * H], bih[2 * H:]])
        V = V.at[_V_BI + l, :3 * H].set(comb)
        V = V.at[_V_BHN + l, :H].set(bhh[2 * H:])
    return W, V


@jax.jit
def spiralnet_classifier_gru(x, params):
    S, B, Din = x.shape
    # Pad batch to the 8-row sublane width and flatten time-major so every
    # per-timestep block inside the kernel is a clean sublane-aligned tile.
    x_pad = jnp.pad(x, ((0, 0), (0, BP - B), (0, 0)))
    x_flat = x_pad.reshape(S * BP, Din)
    W, V = pack_params(params)

    vmem = lambda: pl.BlockSpec(memory_space=pltpu.MemorySpace.VMEM)
    out = pl.pallas_call(
        classifier_kernel,
        out_shape=jax.ShapeDtypeStruct((BP, PAD_COLS), jnp.float32),
        in_specs=[vmem(), vmem(), vmem()],
        out_specs=vmem(),
    )(x_flat, W, V)
    return out[:B, :NUM_CLASSES]


def init_params(key):
    ks = jax.random.split(key, 16)
    H = EMBED

    def xavier(k, shape):
        fan_in, fan_out = shape[-2], shape[-1]
        lim = (6.0 / (fan_in + fan_out)) ** 0.5
        return jax.random.uniform(k, shape, jnp.float32, -lim, lim)

    def uni(k, shape, bound):
        return jax.random.uniform(k, shape, jnp.float32, -bound, bound)

    p = {}
    # spiralnet (MLP stand-in) weights: D_IN -> EMBED, then EMBED -> EMBED
    p["sw0"] = xavier(ks[0], (D_IN, H))
    p["sw1"] = xavier(ks[1], (H, H))
    p["sw2"] = xavier(ks[2], (H, H))
    p["sw3"] = xavier(ks[3], (H, H))
    for i in range(N_SPIRAL):
        p[f"sb{i}"] = uni(ks[4 + i], (H,), 1.0 / (H ** 0.5))
    # LayerNorm affine params (PyTorch defaults)
    p["ln_g"] = jnp.ones((H,), jnp.float32)
    p["ln_b"] = jnp.zeros((H,), jnp.float32)
    # GRU: weights stored transposed as (layer, in, 3*H) so the kernel does x @ W.
    # Module applies xavier_uniform_ only to >=2D params; 1-D biases keep PyTorch's
    # default uniform(-1/sqrt(H), 1/sqrt(H)) init.
    p["gru_wih"] = xavier(ks[8], (N_GRU, H, 3 * H))
    p["gru_whh"] = xavier(ks[9], (N_GRU, H, 3 * H))
    p["gru_bih"] = uni(ks[10], (N_GRU, 3 * H), 1.0 / (H ** 0.5))
    p["gru_bhh"] = uni(ks[11], (N_GRU, 3 * H), 1.0 / (H ** 0.5))
    # classifier head (nn.Linear defaults are uniform(+-1/sqrt(fan_in))-ish)
    p["fc_w"] = uni(ks[12], (H, NUM_CLASSES), 1.0 / (H ** 0.5))
    p["fc_b"] = uni(ks[13], (NUM_CLASSES,), 1.0 / (H ** 0.5))
    return p


if __name__ == "__main__":
    key = jax.random.PRNGKey(0)
    kx, kp = jax.random.split(key)
    x = jax.random.normal(kx, (SEQ, BATCH, D_IN), jnp.float32)   # (seq, batch, feat)
    params = init_params(kp)

    logits = spiralnet_classifier_gru(x, params)
    logits = jax.block_until_ready(logits)
    assert logits.shape == (BATCH, NUM_CLASSES)
    assert bool(jnp.all(jnp.isfinite(logits)))
    print("KERNEL_OK")
</pallas_src>

<mosaic_0001>
module attributes {stable_mosaic.version = 11 : i64} {
  func.func @classifier_kernel(%arg0: memref<64x16xf32, #tpu.memory_space<vmem>>, %arg1: memref<272x128xf32, #tpu.memory_space<vmem>>, %arg2: memref<16x128xf32, #tpu.memory_space<vmem>>, %arg3: memref<8x128xf32, #tpu.memory_space<vmem>>) attributes {dimension_semantics = [], scalar_prefetch = 0 : i64, scratch_operands = 0 : i64, tpu.core_type = #tpu.core_type<tc>} {
    %c0 = arith.constant 0 : index
    %c0_0 = arith.constant 0 : index
    %0 = vector.load %arg0[%c0, %c0_0] : memref<64x16xf32, #tpu.memory_space<vmem>>, vector<64x16xf32>
    %c0_1 = arith.constant 0 : index
    %c0_2 = arith.constant 0 : index
    %1 = vector.load %arg2[%c0_1, %c0_2] : memref<16x128xf32, #tpu.memory_space<vmem>>, vector<16x128xf32>
    %c0_3 = arith.constant 0 : index
    %c0_4 = arith.constant 0 : index
    %2 = vector.load %arg1[%c0_3, %c0_4] : memref<272x128xf32, #tpu.memory_space<vmem>>, vector<16x32xf32>
    %3 = vector.extract_strided_slice %1 {offsets = [0, 0], sizes = [1, 32], strides = [1, 1]} : vector<16x128xf32> to vector<1x32xf32>
    %cst = arith.constant dense<0.000000e+00> : vector<64x32xf32>
    %4 = tpu.matmul %0, %2, %cst {dimension_numbers = #tpu.dot_dimension_numbers<[1], [0], [0], [1], [0, 0, 1, 1], [], []>} : vector<64x16xf32>, vector<16x32xf32>, vector<64x32xf32> -> vector<64x32xf32>
    %5 = vector.broadcast %3 : vector<1x32xf32> to vector<64x32xf32>
    %6 = arith.addf %4, %5 : vector<64x32xf32>
    %cst_5 = arith.constant 0.000000e+00 : f32
    %7 = vector.broadcast %cst_5 : f32 to vector<64x32xf32>
    %8 = arith.maximumf %6, %7 : vector<64x32xf32>
    %c16 = arith.constant 16 : index
    %c0_6 = arith.constant 0 : index
    %9 = vector.load %arg1[%c16, %c0_6] : memref<272x128xf32, #tpu.memory_space<vmem>>, vector<32x32xf32>
    %10 = vector.extract_strided_slice %1 {offsets = [1, 0], sizes = [1, 32], strides = [1, 1]} : vector<16x128xf32> to vector<1x32xf32>
    %cst_7 = arith.constant dense<0.000000e+00> : vector<64x32xf32>
    %11 = tpu.matmul %8, %9, %cst_7 {dimension_numbers = #tpu.dot_dimension_numbers<[1], [0], [0], [1], [0, 0, 1, 1], [], []>} : vector<64x32xf32>, vector<32x32xf32>, vector<64x32xf32> -> vector<64x32xf32>
    %12 = vector.broadcast %10 : vector<1x32xf32> to vector<64x32xf32>
    %13 = arith.addf %11, %12 : vector<64x32xf32>
    %cst_8 = arith.constant 0.000000e+00 : f32
    %14 = vector.broadcast %cst_8 : f32 to vector<64x32xf32>
    %15 = arith.maximumf %13, %14 : vector<64x32xf32>
    %c48 = arith.constant 48 : index
    %c0_9 = arith.constant 0 : index
    %16 = vector.load %arg1[%c48, %c0_9] : memref<272x128xf32, #tpu.memory_space<vmem>>, vector<32x32xf32>
    %17 = vector.extract_strided_slice %1 {offsets = [2, 0], sizes = [1, 32], strides = [1, 1]} : vector<16x128xf32> to vector<1x32xf32>
    %cst_10 = arith.constant dense<0.000000e+00> : vector<64x32xf32>
    %18 = tpu.matmul %15, %16, %cst_10 {dimension_numbers = #tpu.dot_dimension_numbers<[1], [0], [0], [1], [0, 0, 1, 1], [], []>} : vector<64x32xf32>, vector<32x32xf32>, vector<64x32xf32> -> vector<64x32xf32>
    %19 = vector.broadcast %17 : vector<1x32xf32> to vector<64x32xf32>
    %20 = arith.addf %18, %19 : vector<64x32xf32>
    %cst_11 = arith.constant 0.000000e+00 : f32
    %21 = vector.broadcast %cst_11 : f32 to vector<64x32xf32>
    %22 = arith.maximumf %20, %21 : vector<64x32xf32>
    %c80 = arith.constant 80 : index
    %c0_12 = arith.constant 0 : index
    %23 = vector.load %arg1[%c80, %c0_12] : memref<272x128xf32, #tpu.memory_space<vmem>>, vector<32x32xf32>
    %24 = vector.extract_strided_slice %1 {offsets = [3, 0], sizes = [1, 32], strides = [1, 1]} : vector<16x128xf32> to vector<1x32xf32>
    %cst_13 = arith.constant dense<0.000000e+00> : vector<64x32xf32>
    %25 = tpu.matmul %22, %23, %cst_13 {dimension_numbers = #tpu.dot_dimension_numbers<[1], [0], [0], [1], [0, 0, 1, 1], [], []>} : vector<64x32xf32>, vector<32x32xf32>, vector<64x32xf32> -> vector<64x32xf32>
    %26 = vector.broadcast %24 : vector<1x32xf32> to vector<64x32xf32>
    %27 = arith.addf %25, %26 : vector<64x32xf32>
    %cst_14 = arith.constant dense<0.000000e+00> : vector<64xf32>
    %28 = vector.multi_reduction <add>, %27, %cst_14 [1] : vector<64x32xf32> to vector<64xf32>
    %29 = vector.shape_cast %28 : vector<64xf32> to vector<64x1xf32>
    %cst_15 = arith.constant 3.200000e+01 : f32
    %30 = vector.broadcast %cst_15 : f32 to vector<64x1xf32>
    %31 = arith.divf %29, %30 : vector<64x1xf32>
    %32 = vector.broadcast %31 : vector<64x1xf32> to vector<64x32xf32>
    %33 = arith.subf %27, %32 : vector<64x32xf32>
    %34 = arith.mulf %33, %33 : vector<64x32xf32>
    %cst_16 = arith.constant dense<0.000000e+00> : vector<64xf32>
    %35 = vector.multi_reduction <add>, %34, %cst_16 [1] : vector<64x32xf32> to vector<64xf32>
    %36 = vector.shape_cast %35 : vector<64xf32> to vector<64x1xf32>
    %cst_17 = arith.constant 3.200000e+01 : f32
    %37 = vector.broadcast %cst_17 : f32 to vector<64x1xf32>
    %38 = arith.divf %36, %37 : vector<64x1xf32>
    %cst_18 = arith.constant 9.99999974E-6 : f32
    %39 = vector.broadcast %cst_18 : f32 to vector<64x1xf32>
    %40 = arith.addf %38, %39 : vector<64x1xf32>
    %41 = math.rsqrt %40 : vector<64x1xf32>
    %42 = vector.broadcast %41 : vector<64x1xf32> to vector<64x32xf32>
    %43 = arith.mulf %33, %42 : vector<64x32xf32>
    %44 = vector.extract_strided_slice %1 {offsets = [4, 0], sizes = [1, 32], strides = [1, 1]} : vector<16x128xf32> to vector<1x32xf32>
    %45 = vector.broadcast %44 : vector<1x32xf32> to vector<64x32xf32>
    %46 = arith.mulf %43, %45 : vector<64x32xf32>
    %47 = vector.extract_strided_slice %1 {offsets = [5, 0], sizes = [1, 32], strides = [1, 1]} : vector<16x128xf32> to vector<1x32xf32>
    %48 = vector.broadcast %47 : vector<1x32xf32> to vector<64x32xf32>
    %49 = arith.addf %46, %48 : vector<64x32xf32>
    %c144 = arith.constant 144 : index
    %c0_19 = arith.constant 0 : index
    %50 = vector.load %arg1[%c144, %c0_19] : memref<272x128xf32, #tpu.memory_space<vmem>>, vector<32x96xf32>
    %c208 = arith.constant 208 : index
    %c0_20 = arith.constant 0 : index
    %51 = vector.load %arg1[%c208, %c0_20] : memref<272x128xf32, #tpu.memory_space<vmem>>, vector<32x96xf32>
    %52 = vector.extract_strided_slice %1 {offsets = [8, 0], sizes = [1, 96], strides = [1, 1]} : vector<16x128xf32> to vector<1x96xf32>
    %53 = vector.extract_strided_slice %1 {offsets = [10, 0], sizes = [1, 32], strides = [1, 1]} : vector<16x128xf32> to vector<1x32xf32>
    %cst_21 = arith.constant dense<0.000000e+00> : vector<64x96xf32>
    %54 = tpu.matmul %49, %50, %cst_21 {dimension_numbers = #tpu.dot_dimension_numbers<[1], [0], [0], [1], [0, 0, 1, 1], [], []>} : vector<64x32xf32>, vector<32x96xf32>, vector<64x96xf32> -> vector<64x96xf32>
    %55 = vector.broadcast %52 : vector<1x96xf32> to vector<64x96xf32>
    %56 = arith.addf %54, %55 : vector<64x96xf32>
    %cst_22 = arith.constant 0.000000e+00 : f32
    %57 = vector.broadcast %cst_22 : f32 to vector<8x32xf32>
    %58 = vector.extract_strided_slice %56 {offsets = [0, 0], sizes = [8, 96], strides = [1, 1]} : vector<64x96xf32> to vector<8x96xf32>
    %cst_23 = arith.constant dense<0.000000e+00> : vector<8x96xf32>
    %59 = tpu.matmul %57, %51, %cst_23 {dimension_numbers = #tpu.dot_dimension_numbers<[1], [0], [0], [1], [0, 0, 1, 1], [], []>} : vector<8x32xf32>, vector<32x96xf32>, vector<8x96xf32> -> vector<8x96xf32>
    %60 = vector.extract_strided_slice %58 {offsets = [0, 0], sizes = [8, 64], strides = [1, 1]} : vector<8x96xf32> to vector<8x64xf32>
    %61 = vector.extract_strided_slice %59 {offsets = [0, 0], sizes = [8, 64], strides = [1, 1]} : vector<8x96xf32> to vector<8x64xf32>
    %62 = arith.addf %60, %61 : vector<8x64xf32>
    %63 = arith.negf %62 : vector<8x64xf32>
    %64 = math.exp %63 : vector<8x64xf32>
    %cst_24 = arith.constant 1.000000e+00 : f32
    %65 = vector.broadcast %cst_24 : f32 to vector<8x64xf32>
    %66 = arith.addf %65, %64 : vector<8x64xf32>
    %67 = arith.divf %65, %66 : vector<8x64xf32>
    %68 = vector.extract_strided_slice %67 {offsets = [0, 0], sizes = [8, 32], strides = [1, 1]} : vector<8x64xf32> to vector<8x32xf32>
    %69 = vector.extract_strided_slice %67 {offsets = [0, 32], sizes = [8, 32], strides = [1, 1]} : vector<8x64xf32> to vector<8x32xf32>
    %70 = vector.extract_strided_slice %58 {offsets = [0, 64], sizes = [8, 32], strides = [1, 1]} : vector<8x96xf32> to vector<8x32xf32>
    %71 = vector.extract_strided_slice %59 {offsets = [0, 64], sizes = [8, 32], strides = [1, 1]} : vector<8x96xf32> to vector<8x32xf32>
    %72 = vector.broadcast %53 : vector<1x32xf32> to vector<8x32xf32>
    %73 = arith.addf %71, %72 : vector<8x32xf32>
    %74 = arith.mulf %68, %73 : vector<8x32xf32>
    %75 = arith.addf %70, %74 : vector<8x32xf32>
    %76 = math.tanh %75 : vector<8x32xf32>
    %cst_25 = arith.constant 1.000000e+00 : f32
    %77 = vector.broadcast %cst_25 : f32 to vector<8x32xf32>
    %78 = arith.subf %77, %69 : vector<8x32xf32>
    %79 = arith.mulf %78, %76 : vector<8x32xf32>
    %80 = arith.mulf %69, %57 : vector<8x32xf32>
    %81 = arith.addf %79, %80 : vector<8x32xf32>
    %82 = vector.extract_strided_slice %56 {offsets = [8, 0], sizes = [8, 96], strides = [1, 1]} : vector<64x96xf32> to vector<8x96xf32>
    %cst_26 = arith.constant dense<0.000000e+00> : vector<8x96xf32>
    %83 = tpu.matmul %81, %51, %cst_26 {dimension_numbers = #tpu.dot_dimension_numbers<[1], [0], [0], [1], [0, 0, 1, 1], [], []>} : vector<8x32xf32>, vector<32x96xf32>, vector<8x96xf32> -> vector<8x96xf32>
    %84 = vector.extract_strided_slice %82 {offsets = [0, 0], sizes = [8, 64], strides = [1, 1]} : vector<8x96xf32> to vector<8x64xf32>
    %85 = vector.extract_strided_slice %83 {offsets = [0, 0], sizes = [8, 64], strides = [1, 1]} : vector<8x96xf32> to vector<8x64xf32>
    %86 = arith.addf %84, %85 : vector<8x64xf32>
    %87 = arith.negf %86 : vector<8x64xf32>
    %88 = math.exp %87 : vector<8x64xf32>
    %cst_27 = arith.constant 1.000000e+00 : f32
    %89 = vector.broadcast %cst_27 : f32 to vector<8x64xf32>
    %90 = arith.addf %89, %88 : vector<8x64xf32>
    %91 = arith.divf %89, %90 : vector<8x64xf32>
    %92 = vector.extract_strided_slice %91 {offsets = [0, 0], sizes = [8, 32], strides = [1, 1]} : vector<8x64xf32> to vector<8x32xf32>
    %93 = vector.extract_strided_slice %91 {offsets = [0, 32], sizes = [8, 32], strides = [1, 1]} : vector<8x64xf32> to vector<8x32xf32>
    %94 = vector.extract_strided_slice %82 {offsets = [0, 64], sizes = [8, 32], strides = [1, 1]} : vector<8x96xf32> to vector<8x32xf32>
    %95 = vector.extract_strided_slice %83 {offsets = [0, 64], sizes = [8, 32], strides = [1, 1]} : vector<8x96xf32> to vector<8x32xf32>
    %96 = vector.broadcast %53 : vector<1x32xf32> to vector<8x32xf32>
    %97 = arith.addf %95, %96 : vector<8x32xf32>
    %98 = arith.mulf %92, %97 : vector<8x32xf32>
    %99 = arith.addf %94, %98 : vector<8x32xf32>
    %100 = math.tanh %99 : vector<8x32xf32>
    %cst_28 = arith.constant 1.000000e+00 : f32
    %101 = vector.broadcast %cst_28 : f32 to vector<8x32xf32>
    %102 = arith.subf %101, %93 : vector<8x32xf32>
    %103 = arith.mulf %102, %100 : vector<8x32xf32>
    %104 = arith.mulf %93, %81 : vector<8x32xf32>
    %105 = arith.addf %103, %104 : vector<8x32xf32>
    %106 = vector.extract_strided_slice %56 {offsets = [16, 0], sizes = [8, 96], strides = [1, 1]} : vector<64x96xf32> to vector<8x96xf32>
    %cst_29 = arith.constant dense<0.000000e+00> : vector<8x96xf32>
    %107 = tpu.matmul %105, %51, %cst_29 {dimension_numbers = #tpu.dot_dimension_numbers<[1], [0], [0], [1], [0, 0, 1, 1], [], []>} : vector<8x32xf32>, vector<32x96xf32>, vector<8x96xf32> -> vector<8x96xf32>
    %108 = vector.extract_strided_slice %106 {offsets = [0, 0], sizes = [8, 64], strides = [1, 1]} : vector<8x96xf32> to vector<8x64xf32>
    %109 = vector.extract_strided_slice %107 {offsets = [0, 0], sizes = [8, 64], strides = [1, 1]} : vector<8x96xf32> to vector<8x64xf32>
    %110 = arith.addf %108, %109 : vector<8x64xf32>
    %111 = arith.negf %110 : vector<8x64xf32>
    %112 = math.exp %111 : vector<8x64xf32>
    %cst_30 = arith.constant 1.000000e+00 : f32
    %113 = vector.broadcast %cst_30 : f32 to vector<8x64xf32>
    %114 = arith.addf %113, %112 : vector<8x64xf32>
    %115 = arith.divf %113, %114 : vector<8x64xf32>
    %116 = vector.extract_strided_slice %115 {offsets = [0, 0], sizes = [8, 32], strides = [1, 1]} : vector<8x64xf32> to vector<8x32xf32>
    %117 = vector.extract_strided_slice %115 {offsets = [0, 32], sizes = [8, 32], strides = [1, 1]} : vector<8x64xf32> to vector<8x32xf32>
    %118 = vector.extract_strided_slice %106 {offsets = [0, 64], sizes = [8, 32], strides = [1, 1]} : vector<8x96xf32> to vector<8x32xf32>
    %119 = vector.extract_strided_slice %107 {offsets = [0, 64], sizes = [8, 32], strides = [1, 1]} : vector<8x96xf32> to vector<8x32xf32>
    %120 = vector.broadcast %53 : vector<1x32xf32> to vector<8x32xf32>
    %121 = arith.addf %119, %120 : vector<8x32xf32>
    %122 = arith.mulf %116, %121 : vector<8x32xf32>
    %123 = arith.addf %118, %122 : vector<8x32xf32>
    %124 = math.tanh %123 : vector<8x32xf32>
    %cst_31 = arith.constant 1.000000e+00 : f32
    %125 = vector.broadcast %cst_31 : f32 to vector<8x32xf32>
    %126 = arith.subf %125, %117 : vector<8x32xf32>
    %127 = arith.mulf %126, %124 : vector<8x32xf32>
    %128 = arith.mulf %117, %105 : vector<8x32xf32>
    %129 = arith.addf %127, %128 : vector<8x32xf32>
    %130 = vector.extract_strided_slice %56 {offsets = [24, 0], sizes = [8, 96], strides = [1, 1]} : vector<64x96xf32> to vector<8x96xf32>
    %cst_32 = arith.constant dense<0.000000e+00> : vector<8x96xf32>
    %131 = tpu.matmul %129, %51, %cst_32 {dimension_numbers = #tpu.dot_dimension_numbers<[1], [0], [0], [1], [0, 0, 1, 1], [], []>} : vector<8x32xf32>, vector<32x96xf32>, vector<8x96xf32> -> vector<8x96xf32>
    %132 = vector.extract_strided_slice %130 {offsets = [0, 0], sizes = [8, 64], strides = [1, 1]} : vector<8x96xf32> to vector<8x64xf32>
    %133 = vector.extract_strided_slice %131 {offsets = [0, 0], sizes = [8, 64], strides = [1, 1]} : vector<8x96xf32> to vector<8x64xf32>
    %134 = arith.addf %132, %133 : vector<8x64xf32>
    %135 = arith.negf %134 : vector<8x64xf32>
    %136 = math.exp %135 : vector<8x64xf32>
    %cst_33 = arith.constant 1.000000e+00 : f32
    %137 = vector.broadcast %cst_33 : f32 to vector<8x64xf32>
    %138 = arith.addf %137, %136 : vector<8x64xf32>
    %139 = arith.divf %137, %138 : vector<8x64xf32>
    %140 = vector.extract_strided_slice %139 {offsets = [0, 0], sizes = [8, 32], strides = [1, 1]} : vector<8x64xf32> to vector<8x32xf32>
    %141 = vector.extract_strided_slice %139 {offsets = [0, 32], sizes = [8, 32], strides = [1, 1]} : vector<8x64xf32> to vector<8x32xf32>
    %142 = vector.extract_strided_slice %130 {offsets = [0, 64], sizes = [8, 32], strides = [1, 1]} : vector<8x96xf32> to vector<8x32xf32>
    %143 = vector.extract_strided_slice %131 {offsets = [0, 64], sizes = [8, 32], strides = [1, 1]} : vector<8x96xf32> to vector<8x32xf32>
    %144 = vector.broadcast %53 : vector<1x32xf32> to vector<8x32xf32>
    %145 = arith.addf %143, %144 : vector<8x32xf32>
    %146 = arith.mulf %140, %145 : vector<8x32xf32>
    %147 = arith.addf %142, %146 : vector<8x32xf32>
    %148 = math.tanh %147 : vector<8x32xf32>
    %cst_34 = arith.constant 1.000000e+00 : f32
    %149 = vector.broadcast %cst_34 : f32 to vector<8x32xf32>
    %150 = arith.subf %149, %141 : vector<8x32xf32>
    %151 = arith.mulf %150, %148 : vector<8x32xf32>
    %152 = arith.mulf %141, %129 : vector<8x32xf32>
    %153 = arith.addf %151, %152 : vector<8x32xf32>
    %154 = vector.extract_strided_slice %56 {offsets = [32, 0], sizes = [8, 96], strides = [1, 1]} : vector<64x96xf32> to vector<8x96xf32>
    %cst_35 = arith.constant dense<0.000000e+00> : vector<8x96xf32>
    %155 = tpu.matmul %153, %51, %cst_35 {dimension_numbers = #tpu.dot_dimension_numbers<[1], [0], [0], [1], [0, 0, 1, 1], [], []>} : vector<8x32xf32>, vector<32x96xf32>, vector<8x96xf32> -> vector<8x96xf32>
    %156 = vector.extract_strided_slice %154 {offsets = [0, 0], sizes = [8, 64], strides = [1, 1]} : vector<8x96xf32> to vector<8x64xf32>
    %157 = vector.extract_strided_slice %155 {offsets = [0, 0], sizes = [8, 64], strides = [1, 1]} : vector<8x96xf32> to vector<8x64xf32>
    %158 = arith.addf %156, %157 : vector<8x64xf32>
    %159 = arith.negf %158 : vector<8x64xf32>
    %160 = math.exp %159 : vector<8x64xf32>
    %cst_36 = arith.constant 1.000000e+00 : f32
    %161 = vector.broadcast %cst_36 : f32 to vector<8x64xf32>
    %162 = arith.addf %161, %160 : vector<8x64xf32>
    %163 = arith.divf %161, %162 : vector<8x64xf32>
    %164 = vector.extract_strided_slice %163 {offsets = [0, 0], sizes = [8, 32], strides = [1, 1]} : vector<8x64xf32> to vector<8x32xf32>
    %165 = vector.extract_strided_slice %163 {offsets = [0, 32], sizes = [8, 32], strides = [1, 1]} : vector<8x64xf32> to vector<8x32xf32>
    %166 = vector.extract_strided_slice %154 {offsets = [0, 64], sizes = [8, 32], strides = [1, 1]} : vector<8x96xf32> to vector<8x32xf32>
    %167 = vector.extract_strided_slice %155 {offsets = [0, 64], sizes = [8, 32], strides = [1, 1]} : vector<8x96xf32> to vector<8x32xf32>
    %168 = vector.broadcast %53 : vector<1x32xf32> to vector<8x32xf32>
    %169 = arith.addf %167, %168 : vector<8x32xf32>
    %170 = arith.mulf %164, %169 : vector<8x32xf32>
    %171 = arith.addf %166, %170 : vector<8x32xf32>
    %172 = math.tanh %171 : vector<8x32xf32>
    %cst_37 = arith.constant 1.000000e+00 : f32
    %173 = vector.broadcast %cst_37 : f32 to vector<8x32xf32>
    %174 = arith.subf %173, %165 : vector<8x32xf32>
    %175 = arith.mulf %174, %172 : vector<8x32xf32>
    %176 = arith.mulf %165, %153 : vector<8x32xf32>
    %177 = arith.addf %175, %176 : vector<8x32xf32>
    %178 = vector.extract_strided_slice %56 {offsets = [40, 0], sizes = [8, 96], strides = [1, 1]} : vector<64x96xf32> to vector<8x96xf32>
    %cst_38 = arith.constant dense<0.000000e+00> : vector<8x96xf32>
    %179 = tpu.matmul %177, %51, %cst_38 {dimension_numbers = #tpu.dot_dimension_numbers<[1], [0], [0], [1], [0, 0, 1, 1], [], []>} : vector<8x32xf32>, vector<32x96xf32>, vector<8x96xf32> -> vector<8x96xf32>
    %180 = vector.extract_strided_slice %178 {offsets = [0, 0], sizes = [8, 64], strides = [1, 1]} : vector<8x96xf32> to vector<8x64xf32>
    %181 = vector.extract_strided_slice %179 {offsets = [0, 0], sizes = [8, 64], strides = [1, 1]} : vector<8x96xf32> to vector<8x64xf32>
    %182 = arith.addf %180, %181 : vector<8x64xf32>
    %183 = arith.negf %182 : vector<8x64xf32>
    %184 = math.exp %183 : vector<8x64xf32>
    %cst_39 = arith.constant 1.000000e+00 : f32
    %185 = vector.broadcast %cst_39 : f32 to vector<8x64xf32>
    %186 = arith.addf %185, %184 : vector<8x64xf32>
    %187 = arith.divf %185, %186 : vector<8x64xf32>
    %188 = vector.extract_strided_slice %187 {offsets = [0, 0], sizes = [8, 32], strides = [1, 1]} : vector<8x64xf32> to vector<8x32xf32>
    %189 = vector.extract_strided_slice %187 {offsets = [0, 32], sizes = [8, 32], strides = [1, 1]} : vector<8x64xf32> to vector<8x32xf32>
    %190 = vector.extract_strided_slice %178 {offsets = [0, 64], sizes = [8, 32], strides = [1, 1]} : vector<8x96xf32> to vector<8x32xf32>
    %191 = vector.extract_strided_slice %179 {offsets = [0, 64], sizes = [8, 32], strides = [1, 1]} : vector<8x96xf32> to vector<8x32xf32>
    %192 = vector.broadcast %53 : vector<1x32xf32> to vector<8x32xf32>
    %193 = arith.addf %191, %192 : vector<8x32xf32>
    %194 = arith.mulf %188, %193 : vector<8x32xf32>
    %195 = arith.addf %190, %194 : vector<8x32xf32>
    %196 = math.tanh %195 : vector<8x32xf32>
    %cst_40 = arith.constant 1.000000e+00 : f32
    %197 = vector.broadcast %cst_40 : f32 to vector<8x32xf32>
    %198 = arith.subf %197, %189 : vector<8x32xf32>
    %199 = arith.mulf %198, %196 : vector<8x32xf32>
    %200 = arith.mulf %189, %177 : vector<8x32xf32>
    %201 = arith.addf %199, %200 : vector<8x32xf32>
    %202 = vector.extract_strided_slice %56 {offsets = [48, 0], sizes = [8, 96], strides = [1, 1]} : vector<64x96xf32> to vector<8x96xf32>
    %cst_41 = arith.constant dense<0.000000e+00> : vector<8x96xf32>
    %203 = tpu.matmul %201, %51, %cst_41 {dimension_numbers = #tpu.dot_dimension_numbers<[1], [0], [0], [1], [0, 0, 1, 1], [], []>} : vector<8x32xf32>, vector<32x96xf32>, vector<8x96xf32> -> vector<8x96xf32>
    %204 = vector.extract_strided_slice %202 {offsets = [0, 0], sizes = [8, 64], strides = [1, 1]} : vector<8x96xf32> to vector<8x64xf32>
    %205 = vector.extract_strided_slice %203 {offsets = [0, 0], sizes = [8, 64], strides = [1, 1]} : vector<8x96xf32> to vector<8x64xf32>
    %206 = arith.addf %204, %205 : vector<8x64xf32>
    %207 = arith.negf %206 : vector<8x64xf32>
    %208 = math.exp %207 : vector<8x64xf32>
    %cst_42 = arith.constant 1.000000e+00 : f32
    %209 = vector.broadcast %cst_42 : f32 to vector<8x64xf32>
    %210 = arith.addf %209, %208 : vector<8x64xf32>
    %211 = arith.divf %209, %210 : vector<8x64xf32>
    %212 = vector.extract_strided_slice %211 {offsets = [0, 0], sizes = [8, 32], strides = [1, 1]} : vector<8x64xf32> to vector<8x32xf32>
    %213 = vector.extract_strided_slice %211 {offsets = [0, 32], sizes = [8, 32], strides = [1, 1]} : vector<8x64xf32> to vector<8x32xf32>
    %214 = vector.extract_strided_slice %202 {offsets = [0, 64], sizes = [8, 32], strides = [1, 1]} : vector<8x96xf32> to vector<8x32xf32>
    %215 = vector.extract_strided_slice %203 {offsets = [0, 64], sizes = [8, 32], strides = [1, 1]} : vector<8x96xf32> to vector<8x32xf32>
    %216 = vector.broadcast %53 : vector<1x32xf32> to vector<8x32xf32>
    %217 = arith.addf %215, %216 : vector<8x32xf32>
    %218 = arith.mulf %212, %217 : vector<8x32xf32>
    %219 = arith.addf %214, %218 : vector<8x32xf32>
    %220 = math.tanh %219 : vector<8x32xf32>
    %cst_43 = arith.constant 1.000000e+00 : f32
    %221 = vector.broadcast %cst_43 : f32 to vector<8x32xf32>
    %222 = arith.subf %221, %213 : vector<8x32xf32>
    %223 = arith.mulf %222, %220 : vector<8x32xf32>
    %224 = arith.mulf %213, %201 : vector<8x32xf32>
    %225 = arith.addf %223, %224 : vector<8x32xf32>
    %226 = vector.extract_strided_slice %56 {offsets = [56, 0], sizes = [8, 96], strides = [1, 1]} : vector<64x96xf32> to vector<8x96xf32>
    %cst_44 = arith.constant dense<0.000000e+00> : vector<8x96xf32>
    %227 = tpu.matmul %225, %51, %cst_44 {dimension_numbers = #tpu.dot_dimension_numbers<[1], [0], [0], [1], [0, 0, 1, 1], [], []>} : vector<8x32xf32>, vector<32x96xf32>, vector<8x96xf32> -> vector<8x96xf32>
    %228 = vector.extract_strided_slice %226 {offsets = [0, 0], sizes = [8, 64], strides = [1, 1]} : vector<8x96xf32> to vector<8x64xf32>
    %229 = vector.extract_strided_slice %227 {offsets = [0, 0], sizes = [8, 64], strides = [1, 1]} : vector<8x96xf32> to vector<8x64xf32>
    %230 = arith.addf %228, %229 : vector<8x64xf32>
    %231 = arith.negf %230 : vector<8x64xf32>
    %232 = math.exp %231 : vector<8x64xf32>
    %cst_45 = arith.constant 1.000000e+00 : f32
    %233 = vector.broadcast %cst_45 : f32 to vector<8x64xf32>
    %234 = arith.addf %233, %232 : vector<8x64xf32>
    %235 = arith.divf %233, %234 : vector<8x64xf32>
    %236 = vector.extract_strided_slice %235 {offsets = [0, 0], sizes = [8, 32], strides = [1, 1]} : vector<8x64xf32> to vector<8x32xf32>
    %237 = vector.extract_strided_slice %235 {offsets = [0, 32], sizes = [8, 32], strides = [1, 1]} : vector<8x64xf32> to vector<8x32xf32>
    %238 = vector.extract_strided_slice %226 {offsets = [0, 64], sizes = [8, 32], strides = [1, 1]} : vector<8x96xf32> to vector<8x32xf32>
    %239 = vector.extract_strided_slice %227 {offsets = [0, 64], sizes = [8, 32], strides = [1, 1]} : vector<8x96xf32> to vector<8x32xf32>
    %240 = vector.broadcast %53 : vector<1x32xf32> to vector<8x32xf32>
    %241 = arith.addf %239, %240 : vector<8x32xf32>
    %242 = arith.mulf %236, %241 : vector<8x32xf32>
    %243 = arith.addf %238, %242 : vector<8x32xf32>
    %244 = math.tanh %243 : vector<8x32xf32>
    %cst_46 = arith.constant 1.000000e+00 : f32
    %245 = vector.broadcast %cst_46 : f32 to vector<8x32xf32>
    %246 = arith.subf %245, %237 : vector<8x32xf32>
    %247 = arith.mulf %246, %244 : vector<8x32xf32>
    %248 = arith.mulf %237, %225 : vector<8x32xf32>
    %249 = arith.addf %247, %248 : vector<8x32xf32>
    %250 = tpu.concatenate %81, %105, %129, %153, %177, %201, %225, %249 in 0 : vector<8x32xf32>, vector<8x32xf32>, vector<8x32xf32>, vector<8x32xf32>, vector<8x32xf32>, vector<8x32xf32>, vector<8x32xf32>, vector<8x32xf32> -> vector<64x32xf32>
    %c176 = arith.constant 176 : index
    %c0_47 = arith.constant 0 : index
    %251 = vector.load %arg1[%c176, %c0_47] : memref<272x128xf32, #tpu.memory_space<vmem>>, vector<32x96xf32>
    %c240 = arith.constant 240 : index
    %c0_48 = arith.constant 0 : index
    %252 = vector.load %arg1[%c240, %c0_48] : memref<272x128xf32, #tpu.memory_space<vmem>>, vector<32x96xf32>
    %253 = vector.extract_strided_slice %1 {offsets = [9, 0], sizes = [1, 96], strides = [1, 1]} : vector<16x128xf32> to vector<1x96xf32>
    %254 = vector.extract_strided_slice %1 {offsets = [11, 0], sizes = [1, 32], strides = [1, 1]} : vector<16x128xf32> to vector<1x32xf32>
    %cst_49 = arith.constant dense<0.000000e+00> : vector<64x96xf32>
    %255 = tpu.matmul %250, %251, %cst_49 {dimension_numbers = #tpu.dot_dimension_numbers<[1], [0], [0], [1], [0, 0, 1, 1], [], []>} : vector<64x32xf32>, vector<32x96xf32>, vector<64x96xf32> -> vector<64x96xf32>
    %256 = vector.broadcast %253 : vector<1x96xf32> to vector<64x96xf32>
    %257 = arith.addf %255, %256 : vector<64x96xf32>
    %cst_50 = arith.constant 0.000000e+00 : f32
    %258 = vector.broadcast %cst_50 : f32 to vector<8x32xf32>
    %259 = vector.extract_strided_slice %257 {offsets = [0, 0], sizes = [8, 96], strides = [1, 1]} : vector<64x96xf32> to vector<8x96xf32>
    %cst_51 = arith.constant dense<0.000000e+00> : vector<8x96xf32>
    %260 = tpu.matmul %258, %252, %cst_51 {dimension_numbers = #tpu.dot_dimension_numbers<[1], [0], [0], [1], [0, 0, 1, 1], [], []>} : vector<8x32xf32>, vector<32x96xf32>, vector<8x96xf32> -> vector<8x96xf32>
    %261 = vector.extract_strided_slice %259 {offsets = [0, 0], sizes = [8, 64], strides = [1, 1]} : vector<8x96xf32> to vector<8x64xf32>
    %262 = vector.extract_strided_slice %260 {offsets = [0, 0], sizes = [8, 64], strides = [1, 1]} : vector<8x96xf32> to vector<8x64xf32>
    %263 = arith.addf %261, %262 : vector<8x64xf32>
    %264 = arith.negf %263 : vector<8x64xf32>
    %265 = math.exp %264 : vector<8x64xf32>
    %cst_52 = arith.constant 1.000000e+00 : f32
    %266 = vector.broadcast %cst_52 : f32 to vector<8x64xf32>
    %267 = arith.addf %266, %265 : vector<8x64xf32>
    %268 = arith.divf %266, %267 : vector<8x64xf32>
    %269 = vector.extract_strided_slice %268 {offsets = [0, 0], sizes = [8, 32], strides = [1, 1]} : vector<8x64xf32> to vector<8x32xf32>
    %270 = vector.extract_strided_slice %268 {offsets = [0, 32], sizes = [8, 32], strides = [1, 1]} : vector<8x64xf32> to vector<8x32xf32>
    %271 = vector.extract_strided_slice %259 {offsets = [0, 64], sizes = [8, 32], strides = [1, 1]} : vector<8x96xf32> to vector<8x32xf32>
    %272 = vector.extract_strided_slice %260 {offsets = [0, 64], sizes = [8, 32], strides = [1, 1]} : vector<8x96xf32> to vector<8x32xf32>
    %273 = vector.broadcast %254 : vector<1x32xf32> to vector<8x32xf32>
    %274 = arith.addf %272, %273 : vector<8x32xf32>
    %275 = arith.mulf %269, %274 : vector<8x32xf32>
    %276 = arith.addf %271, %275 : vector<8x32xf32>
    %277 = math.tanh %276 : vector<8x32xf32>
    %cst_53 = arith.constant 1.000000e+00 : f32
    %278 = vector.broadcast %cst_53 : f32 to vector<8x32xf32>
    %279 = arith.subf %278, %270 : vector<8x32xf32>
    %280 = arith.mulf %279, %277 : vector<8x32xf32>
    %281 = arith.mulf %270, %258 : vector<8x32xf32>
    %282 = arith.addf %280, %281 : vector<8x32xf32>
    %283 = vector.extract_strided_slice %257 {offsets = [8, 0], sizes = [8, 96], strides = [1, 1]} : vector<64x96xf32> to vector<8x96xf32>
    %cst_54 = arith.constant dense<0.000000e+00> : vector<8x96xf32>
    %284 = tpu.matmul %282, %252, %cst_54 {dimension_numbers = #tpu.dot_dimension_numbers<[1], [0], [0], [1], [0, 0, 1, 1], [], []>} : vector<8x32xf32>, vector<32x96xf32>, vector<8x96xf32> -> vector<8x96xf32>
    %285 = vector.extract_strided_slice %283 {offsets = [0, 0], sizes = [8, 64], strides = [1, 1]} : vector<8x96xf32> to vector<8x64xf32>
    %286 = vector.extract_strided_slice %284 {offsets = [0, 0], sizes = [8, 64], strides = [1, 1]} : vector<8x96xf32> to vector<8x64xf32>
    %287 = arith.addf %285, %286 : vector<8x64xf32>
    %288 = arith.negf %287 : vector<8x64xf32>
    %289 = math.exp %288 : vector<8x64xf32>
    %cst_55 = arith.constant 1.000000e+00 : f32
    %290 = vector.broadcast %cst_55 : f32 to vector<8x64xf32>
    %291 = arith.addf %290, %289 : vector<8x64xf32>
    %292 = arith.divf %290, %291 : vector<8x64xf32>
    %293 = vector.extract_strided_slice %292 {offsets = [0, 0], sizes = [8, 32], strides = [1, 1]} : vector<8x64xf32> to vector<8x32xf32>
    %294 = vector.extract_strided_slice %292 {offsets = [0, 32], sizes = [8, 32], strides = [1, 1]} : vector<8x64xf32> to vector<8x32xf32>
    %295 = vector.extract_strided_slice %283 {offsets = [0, 64], sizes = [8, 32], strides = [1, 1]} : vector<8x96xf32> to vector<8x32xf32>
    %296 = vector.extract_strided_slice %284 {offsets = [0, 64], sizes = [8, 32], strides = [1, 1]} : vector<8x96xf32> to vector<8x32xf32>
    %297 = vector.broadcast %254 : vector<1x32xf32> to vector<8x32xf32>
    %298 = arith.addf %296, %297 : vector<8x32xf32>
    %299 = arith.mulf %293, %298 : vector<8x32xf32>
    %300 = arith.addf %295, %299 : vector<8x32xf32>
    %301 = math.tanh %300 : vector<8x32xf32>
    %cst_56 = arith.constant 1.000000e+00 : f32
    %302 = vector.broadcast %cst_56 : f32 to vector<8x32xf32>
    %303 = arith.subf %302, %294 : vector<8x32xf32>
    %304 = arith.mulf %303, %301 : vector<8x32xf32>
    %305 = arith.mulf %294, %282 : vector<8x32xf32>
    %306 = arith.addf %304, %305 : vector<8x32xf32>
    %307 = vector.extract_strided_slice %257 {offsets = [16, 0], sizes = [8, 96], strides = [1, 1]} : vector<64x96xf32> to vector<8x96xf32>
    %cst_57 = arith.constant dense<0.000000e+00> : vector<8x96xf32>
    %308 = tpu.matmul %306, %252, %cst_57 {dimension_numbers = #tpu.dot_dimension_numbers<[1], [0], [0], [1], [0, 0, 1, 1], [], []>} : vector<8x32xf32>, vector<32x96xf32>, vector<8x96xf32> -> vector<8x96xf32>
    %309 = vector.extract_strided_slice %307 {offsets = [0, 0], sizes = [8, 64], strides = [1, 1]} : vector<8x96xf32> to vector<8x64xf32>
    %310 = vector.extract_strided_slice %308 {offsets = [0, 0], sizes = [8, 64], strides = [1, 1]} : vector<8x96xf32> to vector<8x64xf32>
    %311 = arith.addf %309, %310 : vector<8x64xf32>
    %312 = arith.negf %311 : vector<8x64xf32>
    %313 = math.exp %312 : vector<8x64xf32>
    %cst_58 = arith.constant 1.000000e+00 : f32
    %314 = vector.broadcast %cst_58 : f32 to vector<8x64xf32>
    %315 = arith.addf %314, %313 : vector<8x64xf32>
    %316 = arith.divf %314, %315 : vector<8x64xf32>
    %317 = vector.extract_strided_slice %316 {offsets = [0, 0], sizes = [8, 32], strides = [1, 1]} : vector<8x64xf32> to vector<8x32xf32>
    %318 = vector.extract_strided_slice %316 {offsets = [0, 32], sizes = [8, 32], strides = [1, 1]} : vector<8x64xf32> to vector<8x32xf32>
    %319 = vector.extract_strided_slice %307 {offsets = [0, 64], sizes = [8, 32], strides = [1, 1]} : vector<8x96xf32> to vector<8x32xf32>
    %320 = vector.extract_strided_slice %308 {offsets = [0, 64], sizes = [8, 32], strides = [1, 1]} : vector<8x96xf32> to vector<8x32xf32>
    %321 = vector.broadcast %254 : vector<1x32xf32> to vector<8x32xf32>
    %322 = arith.addf %320, %321 : vector<8x32xf32>
    %323 = arith.mulf %317, %322 : vector<8x32xf32>
    %324 = arith.addf %319, %323 : vector<8x32xf32>
    %325 = math.tanh %324 : vector<8x32xf32>
    %cst_59 = arith.constant 1.000000e+00 : f32
    %326 = vector.broadcast %cst_59 : f32 to vector<8x32xf32>
    %327 = arith.subf %326, %318 : vector<8x32xf32>
    %328 = arith.mulf %327, %325 : vector<8x32xf32>
    %329 = arith.mulf %318, %306 : vector<8x32xf32>
    %330 = arith.addf %328, %329 : vector<8x32xf32>
    %331 = vector.extract_strided_slice %257 {offsets = [24, 0], sizes = [8, 96], strides = [1, 1]} : vector<64x96xf32> to vector<8x96xf32>
    %cst_60 = arith.constant dense<0.000000e+00> : vector<8x96xf32>
    %332 = tpu.matmul %330, %252, %cst_60 {dimension_numbers = #tpu.dot_dimension_numbers<[1], [0], [0], [1], [0, 0, 1, 1], [], []>} : vector<8x32xf32>, vector<32x96xf32>, vector<8x96xf32> -> vector<8x96xf32>
    %333 = vector.extract_strided_slice %331 {offsets = [0, 0], sizes = [8, 64], strides = [1, 1]} : vector<8x96xf32> to vector<8x64xf32>
    %334 = vector.extract_strided_slice %332 {offsets = [0, 0], sizes = [8, 64], strides = [1, 1]} : vector<8x96xf32> to vector<8x64xf32>
    %335 = arith.addf %333, %334 : vector<8x64xf32>
    %336 = arith.negf %335 : vector<8x64xf32>
    %337 = math.exp %336 : vector<8x64xf32>
    %cst_61 = arith.constant 1.000000e+00 : f32
    %338 = vector.broadcast %cst_61 : f32 to vector<8x64xf32>
    %339 = arith.addf %338, %337 : vector<8x64xf32>
    %340 = arith.divf %338, %339 : vector<8x64xf32>
    %341 = vector.extract_strided_slice %340 {offsets = [0, 0], sizes = [8, 32], strides = [1, 1]} : vector<8x64xf32> to vector<8x32xf32>
    %342 = vector.extract_strided_slice %340 {offsets = [0, 32], sizes = [8, 32], strides = [1, 1]} : vector<8x64xf32> to vector<8x32xf32>
    %343 = vector.extract_strided_slice %331 {offsets = [0, 64], sizes = [8, 32], strides = [1, 1]} : vector<8x96xf32> to vector<8x32xf32>
    %344 = vector.extract_strided_slice %332 {offsets = [0, 64], sizes = [8, 32], strides = [1, 1]} : vector<8x96xf32> to vector<8x32xf32>
    %345 = vector.broadcast %254 : vector<1x32xf32> to vector<8x32xf32>
    %346 = arith.addf %344, %345 : vector<8x32xf32>
    %347 = arith.mulf %341, %346 : vector<8x32xf32>
    %348 = arith.addf %343, %347 : vector<8x32xf32>
    %349 = math.tanh %348 : vector<8x32xf32>
    %cst_62 = arith.constant 1.000000e+00 : f32
    %350 = vector.broadcast %cst_62 : f32 to vector<8x32xf32>
    %351 = arith.subf %350, %342 : vector<8x32xf32>
    %352 = arith.mulf %351, %349 : vector<8x32xf32>
    %353 = arith.mulf %342, %330 : vector<8x32xf32>
    %354 = arith.addf %352, %353 : vector<8x32xf32>
    %355 = vector.extract_strided_slice %257 {offsets = [32, 0], sizes = [8, 96], strides = [1, 1]} : vector<64x96xf32> to vector<8x96xf32>
    %cst_63 = arith.constant dense<0.000000e+00> : vector<8x96xf32>
    %356 = tpu.matmul %354, %252, %cst_63 {dimension_numbers = #tpu.dot_dimension_numbers<[1], [0], [0], [1], [0, 0, 1, 1], [], []>} : vector<8x32xf32>, vector<32x96xf32>, vector<8x96xf32> -> vector<8x96xf32>
    %357 = vector.extract_strided_slice %355 {offsets = [0, 0], sizes = [8, 64], strides = [1, 1]} : vector<8x96xf32> to vector<8x64xf32>
    %358 = vector.extract_strided_slice %356 {offsets = [0, 0], sizes = [8, 64], strides = [1, 1]} : vector<8x96xf32> to vector<8x64xf32>
    %359 = arith.addf %357, %358 : vector<8x64xf32>
    %360 = arith.negf %359 : vector<8x64xf32>
    %361 = math.exp %360 : vector<8x64xf32>
    %cst_64 = arith.constant 1.000000e+00 : f32
    %362 = vector.broadcast %cst_64 : f32 to vector<8x64xf32>
    %363 = arith.addf %362, %361 : vector<8x64xf32>
    %364 = arith.divf %362, %363 : vector<8x64xf32>
    %365 = vector.extract_strided_slice %364 {offsets = [0, 0], sizes = [8, 32], strides = [1, 1]} : vector<8x64xf32> to vector<8x32xf32>
    %366 = vector.extract_strided_slice %364 {offsets = [0, 32], sizes = [8, 32], strides = [1, 1]} : vector<8x64xf32> to vector<8x32xf32>
    %367 = vector.extract_strided_slice %355 {offsets = [0, 64], sizes = [8, 32], strides = [1, 1]} : vector<8x96xf32> to vector<8x32xf32>
    %368 = vector.extract_strided_slice %356 {offsets = [0, 64], sizes = [8, 32], strides = [1, 1]} : vector<8x96xf32> to vector<8x32xf32>
    %369 = vector.broadcast %254 : vector<1x32xf32> to vector<8x32xf32>
    %370 = arith.addf %368, %369 : vector<8x32xf32>
    %371 = arith.mulf %365, %370 : vector<8x32xf32>
    %372 = arith.addf %367, %371 : vector<8x32xf32>
    %373 = math.tanh %372 : vector<8x32xf32>
    %cst_65 = arith.constant 1.000000e+00 : f32
    %374 = vector.broadcast %cst_65 : f32 to vector<8x32xf32>
    %375 = arith.subf %374, %366 : vector<8x32xf32>
    %376 = arith.mulf %375, %373 : vector<8x32xf32>
    %377 = arith.mulf %366, %354 : vector<8x32xf32>
    %378 = arith.addf %376, %377 : vector<8x32xf32>
    %379 = vector.extract_strided_slice %257 {offsets = [40, 0], sizes = [8, 96], strides = [1, 1]} : vector<64x96xf32> to vector<8x96xf32>
    %cst_66 = arith.constant dense<0.000000e+00> : vector<8x96xf32>
    %380 = tpu.matmul %378, %252, %cst_66 {dimension_numbers = #tpu.dot_dimension_numbers<[1], [0], [0], [1], [0, 0, 1, 1], [], []>} : vector<8x32xf32>, vector<32x96xf32>, vector<8x96xf32> -> vector<8x96xf32>
    %381 = vector.extract_strided_slice %379 {offsets = [0, 0], sizes = [8, 64], strides = [1, 1]} : vector<8x96xf32> to vector<8x64xf32>
    %382 = vector.extract_strided_slice %380 {offsets = [0, 0], sizes = [8, 64], strides = [1, 1]} : vector<8x96xf32> to vector<8x64xf32>
    %383 = arith.addf %381, %382 : vector<8x64xf32>
    %384 = arith.negf %383 : vector<8x64xf32>
    %385 = math.exp %384 : vector<8x64xf32>
    %cst_67 = arith.constant 1.000000e+00 : f32
    %386 = vector.broadcast %cst_67 : f32 to vector<8x64xf32>
    %387 = arith.addf %386, %385 : vector<8x64xf32>
    %388 = arith.divf %386, %387 : vector<8x64xf32>
    %389 = vector.extract_strided_slice %388 {offsets = [0, 0], sizes = [8, 32], strides = [1, 1]} : vector<8x64xf32> to vector<8x32xf32>
    %390 = vector.extract_strided_slice %388 {offsets = [0, 32], sizes = [8, 32], strides = [1, 1]} : vector<8x64xf32> to vector<8x32xf32>
    %391 = vector.extract_strided_slice %379 {offsets = [0, 64], sizes = [8, 32], strides = [1, 1]} : vector<8x96xf32> to vector<8x32xf32>
    %392 = vector.extract_strided_slice %380 {offsets = [0, 64], sizes = [8, 32], strides = [1, 1]} : vector<8x96xf32> to vector<8x32xf32>
    %393 = vector.broadcast %254 : vector<1x32xf32> to vector<8x32xf32>
    %394 = arith.addf %392, %393 : vector<8x32xf32>
    %395 = arith.mulf %389, %394 : vector<8x32xf32>
    %396 = arith.addf %391, %395 : vector<8x32xf32>
    %397 = math.tanh %396 : vector<8x32xf32>
    %cst_68 = arith.constant 1.000000e+00 : f32
    %398 = vector.broadcast %cst_68 : f32 to vector<8x32xf32>
    %399 = arith.subf %398, %390 : vector<8x32xf32>
    %400 = arith.mulf %399, %397 : vector<8x32xf32>
    %401 = arith.mulf %390, %378 : vector<8x32xf32>
    %402 = arith.addf %400, %401 : vector<8x32xf32>
    %403 = vector.extract_strided_slice %257 {offsets = [48, 0], sizes = [8, 96], strides = [1, 1]} : vector<64x96xf32> to vector<8x96xf32>
    %cst_69 = arith.constant dense<0.000000e+00> : vector<8x96xf32>
    %404 = tpu.matmul %402, %252, %cst_69 {dimension_numbers = #tpu.dot_dimension_numbers<[1], [0], [0], [1], [0, 0, 1, 1], [], []>} : vector<8x32xf32>, vector<32x96xf32>, vector<8x96xf32> -> vector<8x96xf32>
    %405 = vector.extract_strided_slice %403 {offsets = [0, 0], sizes = [8, 64], strides = [1, 1]} : vector<8x96xf32> to vector<8x64xf32>
    %406 = vector.extract_strided_slice %404 {offsets = [0, 0], sizes = [8, 64], strides = [1, 1]} : vector<8x96xf32> to vector<8x64xf32>
    %407 = arith.addf %405, %406 : vector<8x64xf32>
    %408 = arith.negf %407 : vector<8x64xf32>
    %409 = math.exp %408 : vector<8x64xf32>
    %cst_70 = arith.constant 1.000000e+00 : f32
    %410 = vector.broadcast %cst_70 : f32 to vector<8x64xf32>
    %411 = arith.addf %410, %409 : vector<8x64xf32>
    %412 = arith.divf %410, %411 : vector<8x64xf32>
    %413 = vector.extract_strided_slice %412 {offsets = [0, 0], sizes = [8, 32], strides = [1, 1]} : vector<8x64xf32> to vector<8x32xf32>
    %414 = vector.extract_strided_slice %412 {offsets = [0, 32], sizes = [8, 32], strides = [1, 1]} : vector<8x64xf32> to vector<8x32xf32>
    %415 = vector.extract_strided_slice %403 {offsets = [0, 64], sizes = [8, 32], strides = [1, 1]} : vector<8x96xf32> to vector<8x32xf32>
    %416 = vector.extract_strided_slice %404 {offsets = [0, 64], sizes = [8, 32], strides = [1, 1]} : vector<8x96xf32> to vector<8x32xf32>
    %417 = vector.broadcast %254 : vector<1x32xf32> to vector<8x32xf32>
    %418 = arith.addf %416, %417 : vector<8x32xf32>
    %419 = arith.mulf %413, %418 : vector<8x32xf32>
    %420 = arith.addf %415, %419 : vector<8x32xf32>
    %421 = math.tanh %420 : vector<8x32xf32>
    %cst_71 = arith.constant 1.000000e+00 : f32
    %422 = vector.broadcast %cst_71 : f32 to vector<8x32xf32>
    %423 = arith.subf %422, %414 : vector<8x32xf32>
    %424 = arith.mulf %423, %421 : vector<8x32xf32>
    %425 = arith.mulf %414, %402 : vector<8x32xf32>
    %426 = arith.addf %424, %425 : vector<8x32xf32>
    %427 = vector.extract_strided_slice %257 {offsets = [56, 0], sizes = [8, 96], strides = [1, 1]} : vector<64x96xf32> to vector<8x96xf32>
    %cst_72 = arith.constant dense<0.000000e+00> : vector<8x96xf32>
    %428 = tpu.matmul %426, %252, %cst_72 {dimension_numbers = #tpu.dot_dimension_numbers<[1], [0], [0], [1], [0, 0, 1, 1], [], []>} : vector<8x32xf32>, vector<32x96xf32>, vector<8x96xf32> -> vector<8x96xf32>
    %429 = vector.extract_strided_slice %427 {offsets = [0, 0], sizes = [8, 64], strides = [1, 1]} : vector<8x96xf32> to vector<8x64xf32>
    %430 = vector.extract_strided_slice %428 {offsets = [0, 0], sizes = [8, 64], strides = [1, 1]} : vector<8x96xf32> to vector<8x64xf32>
    %431 = arith.addf %429, %430 : vector<8x64xf32>
    %432 = arith.negf %431 : vector<8x64xf32>
    %433 = math.exp %432 : vector<8x64xf32>
    %cst_73 = arith.constant 1.000000e+00 : f32
    %434 = vector.broadcast %cst_73 : f32 to vector<8x64xf32>
    %435 = arith.addf %434, %433 : vector<8x64xf32>
    %436 = arith.divf %434, %435 : vector<8x64xf32>
    %437 = vector.extract_strided_slice %436 {offsets = [0, 0], sizes = [8, 32], strides = [1, 1]} : vector<8x64xf32> to vector<8x32xf32>
    %438 = vector.extract_strided_slice %436 {offsets = [0, 32], sizes = [8, 32], strides = [1, 1]} : vector<8x64xf32> to vector<8x32xf32>
    %439 = vector.extract_strided_slice %427 {offsets = [0, 64], sizes = [8, 32], strides = [1, 1]} : vector<8x96xf32> to vector<8x32xf32>
    %440 = vector.extract_strided_slice %428 {offsets = [0, 64], sizes = [8, 32], strides = [1, 1]} : vector<8x96xf32> to vector<8x32xf32>
    %441 = vector.broadcast %254 : vector<1x32xf32> to vector<8x32xf32>
    %442 = arith.addf %440, %441 : vector<8x32xf32>
    %443 = arith.mulf %437, %442 : vector<8x32xf32>
    %444 = arith.addf %439, %443 : vector<8x32xf32>
    %445 = math.tanh %444 : vector<8x32xf32>
    %cst_74 = arith.constant 1.000000e+00 : f32
    %446 = vector.broadcast %cst_74 : f32 to vector<8x32xf32>
    %447 = arith.subf %446, %438 : vector<8x32xf32>
    %448 = arith.mulf %447, %445 : vector<8x32xf32>
    %449 = arith.mulf %438, %426 : vector<8x32xf32>
    %450 = arith.addf %448, %449 : vector<8x32xf32>
    %cst_75 = arith.constant 5.000000e-01 : f32
    %451 = vector.broadcast %cst_75 : f32 to vector<8x32xf32>
    %452 = arith.mulf %451, %450 : vector<8x32xf32>
    %cst_76 = arith.constant 0.707106769 : f32
    %453 = vector.broadcast %cst_76 : f32 to vector<8x32xf32>
    %454 = arith.mulf %450, %453 : vector<8x32xf32>
    %455 = math.absf %454 : vector<8x32xf32>
    %cst_77 = arith.constant 0.327591091 : f32
    %456 = vector.broadcast %cst_77 : f32 to vector<8x32xf32>
    %457 = arith.mulf %456, %455 : vector<8x32xf32>
    %cst_78 = arith.constant 1.000000e+00 : f32
    %458 = vector.broadcast %cst_78 : f32 to vector<8x32xf32>
    %459 = arith.addf %458, %457 : vector<8x32xf32>
    %cst_79 = arith.constant 1.000000e+00 : f32
    %460 = vector.broadcast %cst_79 : f32 to vector<8x32xf32>
    %461 = arith.divf %460, %459 : vector<8x32xf32>
    %cst_80 = arith.constant 1.06140542 : f32
    %462 = vector.broadcast %cst_80 : f32 to vector<8x32xf32>
    %463 = arith.mulf %462, %461 : vector<8x32xf32>
    %cst_81 = arith.constant -1.45315206 : f32
    %464 = vector.broadcast %cst_81 : f32 to vector<8x32xf32>
    %465 = arith.addf %463, %464 : vector<8x32xf32>
    %466 = arith.mulf %465, %461 : vector<8x32xf32>
    %cst_82 = arith.constant 1.42141378 : f32
    %467 = vector.broadcast %cst_82 : f32 to vector<8x32xf32>
    %468 = arith.addf %466, %467 : vector<8x32xf32>
    %469 = arith.mulf %468, %461 : vector<8x32xf32>
    %cst_83 = arith.constant -0.284496725 : f32
    %470 = vector.broadcast %cst_83 : f32 to vector<8x32xf32>
    %471 = arith.addf %469, %470 : vector<8x32xf32>
    %472 = arith.mulf %471, %461 : vector<8x32xf32>
    %cst_84 = arith.constant 0.254829586 : f32
    %473 = vector.broadcast %cst_84 : f32 to vector<8x32xf32>
    %474 = arith.addf %472, %473 : vector<8x32xf32>
    %475 = arith.mulf %474, %461 : vector<8x32xf32>
    %476 = arith.mulf %455, %455 : vector<8x32xf32>
    %cst_85 = arith.constant 0.000000e+00 : f32
    %477 = vector.broadcast %cst_85 : f32 to vector<8x32xf32>
    %478 = arith.subf %477, %476 : vector<8x32xf32>
    %479 = math.exp %478 : vector<8x32xf32>
    %480 = arith.mulf %475, %479 : vector<8x32xf32>
    %cst_86 = arith.constant 1.000000e+00 : f32
    %481 = vector.broadcast %cst_86 : f32 to vector<8x32xf32>
    %482 = arith.subf %481, %480 : vector<8x32xf32>
    %cst_87 = arith.constant 0.000000e+00 : f32
    %483 = vector.broadcast %cst_87 : f32 to vector<8x32xf32>
    %484 = arith.cmpf oge, %454, %483 : vector<8x32xf32>
    %cst_88 = arith.constant 0.000000e+00 : f32
    %485 = vector.broadcast %cst_88 : f32 to vector<8x32xf32>
    %486 = arith.subf %485, %482 : vector<8x32xf32>
    %487 = arith.select %484, %482, %486 : vector<8x32xi1>, vector<8x32xf32>
    %cst_89 = arith.constant 1.000000e+00 : f32
    %488 = vector.broadcast %cst_89 : f32 to vector<8x32xf32>
    %489 = arith.addf %488, %487 : vector<8x32xf32>
    %490 = arith.mulf %452, %489 : vector<8x32xf32>
    %c112 = arith.constant 112 : index
    %c0_90 = arith.constant 0 : index
    %491 = vector.load %arg1[%c112, %c0_90] : memref<272x128xf32, #tpu.memory_space<vmem>>, vector<32x128xf32>
    %cst_91 = arith.constant dense<0.000000e+00> : vector<8x128xf32>
    %492 = tpu.matmul %490, %491, %cst_91 {dimension_numbers = #tpu.dot_dimension_numbers<[1], [0], [0], [1], [0, 0, 1, 1], [], []>} : vector<8x32xf32>, vector<32x128xf32>, vector<8x128xf32> -> vector<8x128xf32>
    %493 = vector.extract_strided_slice %1 {offsets = [6, 0], sizes = [1, 128], strides = [1, 1]} : vector<16x128xf32> to vector<1x128xf32>
    %494 = vector.broadcast %493 : vector<1x128xf32> to vector<8x128xf32>
    %495 = arith.addf %492, %494 : vector<8x128xf32>
    %c0_92 = arith.constant 0 : index
    %c0_93 = arith.constant 0 : index
    %496 = vector.load %arg3[%c0_92, %c0_93] : memref<8x128xf32, #tpu.memory_space<vmem>>, vector<8x128xf32>
    tpu.vector_store %arg3[%c0_92, %c0_93], %495 {strides = array<i32>} : memref<8x128xf32, #tpu.memory_space<vmem>>, vector<8x128xf32>,
    return
  }
}

</mosaic_0001>

<bundles_post_ra>
// kernel: spiralnet_classifier_gru.1
= control target key start
LH: loop header
LB: loop body
LE: loop exit
PB: predicated region body
PF: predicated region fallthrough
CT: control target
= control target key end

     0   :  { %vm30_vm0 = vcmask 130048   ;;  %v26_v23 = vlaneseq  ;;  %vm176_vm1 = vcmask 261120   ;;  %vm3550_vm2 = vmmov 0   ;;  %s3552_s21 = smov 64   ;;  %s3553_s22 = smov 96   ;;  %s4153_s1 = inlined_call_operand.vmem [shape: f32[272,128], index: 1, kind: input, shape index: {}]   ;;  %s4154_s0 = inlined_call_operand.vmem [shape: f32[64,16], index: 0, kind: input, shape index: {}]   ;;  %s4155_s2 = inlined_call_operand.vmem [shape: f32[16,128], index: 2, kind: input, shape index: {}]   ;;  %s4156_s3 = inlined_call_operand.vmem [shape: f32[8,128], index: 3, kind: output, shape index: {}]  }
   0x1   :  { %v24_v0 = vld [vmem:[%s4153_s1] sm:$0xff]  ;;  %v25_v1 = vld [vmem:[%s4153_s1 + $0x8] sm:$0xff]  ;;  %v168_v4 = vld [vmem:[%s4153_s1 + $0x10] sm:$0xff] }
   0x2   :  { %v14_v2 = vld [vmem:[%s4154_s0] sm:$0xff]  ;;  %v3281_v3 = vpack.c.bf16 %v25_v1, %v24_v0  ;;  %v169_v5 = vld [vmem:[%s4153_s1 + $0x18] sm:$0xff]  ;;  %v15_v7 = vld [vmem:[%s4154_s0 + $0x8] sm:$0xff]  ;;  %v3636_v24 = vshrl.u32 %v26_v23, 7 }
   0x3   :  { %2982 = vmatprep.mubr.msk.f32.mxu0 %vm30_vm0, %v14_v2  ;;  %v3285_v6 = vpack.c.bf16 %v169_v5, %v168_v4  ;;  %v170_v8 = vld [vmem:[%s4153_s1 + $0x20] sm:$0xff]  ;;  %v171_v9 = vld [vmem:[%s4153_s1 + $0x28] sm:$0xff]  ;;  %v16_v11 = vld [vmem:[%s4154_s0 + $0x10] sm:$0xff] }
   0x4   :  { %3282 = vmatprep.subr.bf16.mxu0 %v3281_v3  ;;  %v3289_v10 = vpack.c.bf16 %v171_v9, %v170_v8  ;;  %v17_v12 = vld [vmem:[%s4154_s0 + $0x18] sm:$0xff]  ;;  %v314_v13 = vld [vmem:[%s4153_s1 + $0x30] sm:$0xff]  ;;  %v18_v15 = vld [vmem:[%s4154_s0 + $0x20] sm:$0xff]  ;;  %v28_v25 = vsub.s32 0, %v3636_v24  ;;  %v174_v58 = vsub.s32 1, %v3636_v24 }
   0x5   :  { %3284 = vmatpush3.bf16.msra.mxu0 %v3281_v3  ;;  %3286 = vmatprep.subr.bf16.mxu1 %v3285_v6  ;;  %v315_v14 = vld [vmem:[%s4153_s1 + $0x38] sm:$0xff]  ;;  %v316_v17 = vld [vmem:[%s4153_s1 + $0x40] sm:$0xff]  ;;  %v19_v18 = vld [vmem:[%s4154_s0 + $0x28] sm:$0xff] }
   0x6   :  { %3288 = vmatpush3.bf16.msra.mxu1 %v3285_v6  ;;  %v3293_v16 = vpack.c.bf16 %v315_v14, %v314_v13  ;;  %v317_v19 = vld [vmem:[%s4153_s1 + $0x48] sm:$0xff]  ;;  %v20_v20 = vld [vmem:[%s4154_s0 + $0x30] sm:$0xff]  ;;  %v21_v22 = vld [vmem:[%s4154_s0 + $0x38] sm:$0xff] }
   0x7   :  { %3290 = vmatprep.subr.bf16.mxu1 %v3289_v10  ;;  %v3297_v21 = vpack.c.bf16 %v317_v19, %v316_v17  ;;  %v3642_v26 = vld [vmem:[%s4155_s2] sm:$0xff]  ;;  %v459_v35 = vld [vmem:[%s4153_s1 + $0x50] sm:$0xff]  ;;  %v460_v36 = vld [vmem:[%s4153_s1 + $0x58] sm:$0xff] }
   0x8   :  { %2983 = vmatmul.mubr.msk.f32.vlgmr.msra.gmra.mrb[0].mxu0 %vm30_vm0, %v15_v7  ;;  %3294 = vmatprep.subr.bf16.mxu0 %v3293_v16  ;;  %v29_v27 = vrot.slane %v3642_v26, %v28_v25  ;;  %v461_v37 = vld [vmem:[%s4153_s1 + $0x60] sm:$0xff]  ;;  %v3301_v40 = vpack.c.bf16 %v460_v36, %v459_v35  ;;  %v462_v41 = vld [vmem:[%s4153_s1 + $0x68] sm:$0xff]  ;;  %v175_v59 = vrot.slane %v3642_v26, %v174_v58 }
   0x9   :  { %2985 = vmatprep.mubr.msk.f32.mxu0 %vm30_vm0, %v16_v11  ;;  %3296 = vmatpush3.bf16.msra.mxu0 %v3293_v16  ;;  %v3305_v44 = vpack.c.bf16 %v462_v41, %v461_v37  ;;  %v730_v41 = vld [vmem:[%s4153_s1 + $0xd8] sm:$0xff] }
   0xa   :  { %3292 = vmatpush3.bf16.msra.mxu1 %v3289_v10  ;;  %3298 = vmatprep.subr.bf16.mxu0 %v3297_v21 }
   0xb   :  { %3302 = vmatprep.subr.bf16.mxu1 %v3301_v40 }
   0xc   :  { %2986 = vmatmul.mubr.msk.f32.gmra.mrb[2].mxu0 %vm30_vm0, %v17_v12 }
   0xd   :  { %2988 = vmatprep.mubr.msk.f32.mxu0 %vm30_vm0, %v18_v15  ;;  %3300 = vmatpush3.bf16.msra.mxu0 %v3297_v21 }
  0x10   :  { %2989 = vmatmul.mubr.msk.f32.gmra.mrb[4].mxu0 %vm30_vm0, %v19_v18 }
  0x11   :  { %2991 = vmatprep.mubr.msk.f32.mxu0 %vm30_vm0, %v20_v20  ;;  %v320_v20 = vsub.s32 2, %v3636_v24 }
  0x13   :  { %v321_v21 = vrot.slane %v3642_v26, %v320_v20 }
  0x14   :  { %2992 = vmatmul.mubr.msk.f32.gmra.mrb[6].mxu0 %vm30_vm0, %v21_v22 }
  0xdb   :  { %v2984_v28 = vpop.f32.mrb[0].mxu0 }
  0xdc   :  { %v127_v29 = vadd.f32 %v2984_v28, %v29_v27  ;;  %v121_v30 = vpop.f32.mrb[1].mxu0 }
  0xdd   :  { %v122_v31 = vadd.f32 %v121_v30, %v29_v27 }
  0xde   :  { %v161_v33 = vmax.f32 %v127_v29, 0.0 }
  0xdf   :  { %v160_v32 = vmax.f32 %v122_v31, 0.0  ;;  %v2987_v34 = vpop.f32.mrb[2].mxu0  ;;  %v465_v31 = vsub.s32 3, %v3636_v24 }
  0xe0   :  { %v137_v38 = vadd.f32 %v2987_v34, %v29_v27  ;;  %v131_v39 = vpop.f32.mrb[3].mxu0 }
  0xe1   :  { %3002 = vmatprep.mubr.msk.f32.mxu1 %vm176_vm1, %v160_v32  ;;  %v132_v42 = vadd.f32 %v131_v39, %v29_v27  ;;  %v3689_v32 = vrot.slane %v3642_v26, %v465_v31 }
  0xe2   :  { %3003 = vmatmul.mubr.msk.f32.vlgmr.msra.gmra.mrb[0].mxu1 %vm176_vm1, %v161_v33  ;;  %v163_v45 = vmax.f32 %v137_v38, 0.0 }
  0xe3   :  { %v2990_v43 = vpop.f32.mrb[4].mxu0  ;;  %v162_v48 = vmax.f32 %v132_v42, 0.0  ;;  %3304 = vmatpush3.bf16.msra.mxu1 %v3301_v40  ;;  %v729_v40 = vld [vmem:[%s4153_s1 + $0xd0] sm:$0xff] }
  0xe4   :  { %v147_v46 = vadd.f32 %v2990_v43, %v29_v27  ;;  %v141_v47 = vpop.f32.mrb[5].mxu0  ;;  %3306 = vmatprep.subr.bf16.mxu1 %v3305_v44 }
  0xe5   :  { %v142_v49 = vadd.f32 %v141_v47, %v29_v27  ;;  %3005 = vmatprep.mubr.msk.f32.mxu1 %vm176_vm1, %v162_v48  ;;  %v732_v47 = vld [vmem:[%s4153_s1 + $0xe8] sm:$0xff] }
  0xe6   :  { %v165_v54 = vmax.f32 %v147_v46, 0.0  ;;  %3006 = vmatmul.mubr.msk.f32.gmra.mrb[2].mxu1 %vm176_vm1, %v163_v45  ;;  %v3702_v45 = vpack.c.bf16 %v730_v41, %v729_v40  ;;  %v731_v46 = vld [vmem:[%s4153_s1 + $0xe0] sm:$0xff]  ;;  %v715_v40 = vsub.s32 5, %v3636_v24 }
  0xe7   :  { %v2993_v50 = vpop.f32.mrb[6].mxu0  ;;  %v164_v52 = vmax.f32 %v142_v49, 0.0  ;;  %3308 = vmatpush3.bf16.msra.mxu1 %v3305_v44  ;;  %v3549_v44 = vmov 0.0|0.0  }
  0xe8   :  { %v151_v51 = vpop.f32.mrb[7].mxu0  ;;  %v157_v55 = vadd.f32 %v2993_v50, %v29_v27  ;;  %3317 = vmatprep.subr.bf16.mxu1 %v3549_v44 }
  0xe9   :  { %v152_v53 = vadd.f32 %v151_v51, %v29_v27  ;;  %3008 = vmatprep.mubr.msk.f32.mxu1 %vm176_vm1, %v164_v52 }
  0xea   :  { %v167_v57 = vmax.f32 %v157_v55, 0.0  ;;  %3009 = vmatmul.mubr.msk.f32.gmra.mrb[4].mxu1 %vm176_vm1, %v165_v54 }
  0xeb   :  { %v166_v56 = vmax.f32 %v152_v53, 0.0 }
  0xed   :  { %3011 = vmatprep.mubr.msk.f32.mxu1 %vm176_vm1, %v166_v56  ;;  %v3712_v56 = vpack.c.bf16 %v732_v47, %v731_v46  ;;  %v3773_v46 = vrot.slane %v3642_v26, %v715_v40 }
  0xee   :  { %3012 = vmatmul.mubr.msk.f32.gmra.mrb[6].mxu1 %vm176_vm1, %v167_v57 }
 0x1b5   :  { %v3004_v60 = vpop.f32.mrb[0].mxu1 }
 0x1b6   :  { %v273_v61 = vadd.f32 %v3004_v60, %v175_v59  ;;  %v267_v62 = vpop.f32.mrb[1].mxu1 }
 0x1b7   :  { %v268_v63 = vadd.f32 %v267_v62, %v175_v59 }
 0x1b8   :  { %v307_v1 = vmax.f32 %v273_v61, 0.0 }
 0x1b9   :  { %v306_v0 = vmax.f32 %v268_v63, 0.0  ;;  %v3007_v2 = vpop.f32.mrb[2].mxu1 }
 0x1ba   :  { %v283_v3 = vadd.f32 %v3007_v2, %v175_v59  ;;  %v277_v4 = vpop.f32.mrb[3].mxu1 }
 0x1bb   :  { %3022 = vmatprep.mubr.msk.f32.mxu0 %vm176_vm1, %v306_v0  ;;  %v278_v5 = vadd.f32 %v277_v4, %v175_v59 }
 0x1bc   :  { %3023 = vmatmul.mubr.msk.f32.vlgmr.msra.gmra.mrb[8].mxu0 %vm176_vm1, %v307_v1  ;;  %v309_v6 = vmax.f32 %v283_v3, 0.0  ;;  %v3551_v1 = vmov 0.0  }
 0x1bd   :  { %v308_v7 = vmax.f32 %v278_v5, 0.0  ;;  %v3010_v8 = vpop.f32.mrb[4].mxu1 }
 0x1be   :  { %v293_v9 = vadd.f32 %v3010_v8, %v175_v59  ;;  %v287_v10 = vpop.f32.mrb[5].mxu1 }
 0x1bf   :  { %v288_v11 = vadd.f32 %v287_v10, %v175_v59  ;;  %3025 = vmatprep.mubr.msk.f32.mxu0 %vm176_vm1, %v308_v7 }
 0x1c0   :  { %v311_v12 = vmax.f32 %v293_v9, 0.0  ;;  %3026 = vmatmul.mubr.msk.f32.gmra.mrb[10].mxu0 %vm176_vm1, %v309_v6 }
 0x1c1   :  { %v310_v13 = vmax.f32 %v288_v11, 0.0  ;;  %v3013_v14 = vpop.f32.mrb[6].mxu1 }
 0x1c2   :  { %v303_v15 = vadd.f32 %v3013_v14, %v175_v59  ;;  %v297_v16 = vpop.f32.mrb[7].mxu1 }
 0x1c3   :  { %v298_v17 = vadd.f32 %v297_v16, %v175_v59  ;;  %3028 = vmatprep.mubr.msk.f32.mxu0 %vm176_vm1, %v310_v13  ;;  %v726_v13 = vld [vmem:[%s4153_s1 + $0x98] sm:$0xff]  ;;  %v728_v16 = vld [vmem:[%s4153_s1 + $0xa8] sm:$0xff] }
 0x1c4   :  { %v313_v18 = vmax.f32 %v303_v15, 0.0  ;;  %3029 = vmatmul.mubr.msk.f32.gmra.mrb[12].mxu0 %vm176_vm1, %v311_v12  ;;  %v725_v12 = vld [vmem:[%s4153_s1 + $0x90] sm:$0xff]  ;;  %v727_v15 = vld [vmem:[%s4153_s1 + $0xa0] sm:$0xff] }
 0x1c5   :  { %v312_v19 = vmax.f32 %v298_v17, 0.0  ;;  %v3309_v14 = vpack.c.bf16 %v726_v13, %v725_v12  ;;  %v3313_v17 = vpack.c.bf16 %v728_v16, %v727_v15 }
 0x1c7   :  { %3031 = vmatprep.mubr.msk.f32.mxu0 %vm176_vm1, %v312_v19  ;;  %3310 = vmatprep.subr.bf16.mxu0 %v3309_v14 }
 0x1c8   :  { %3032 = vmatmul.mubr.msk.f32.gmra.mrb[14].mxu0 %vm176_vm1, %v313_v18  ;;  %v3749_v18 = vld [vmem:[%s4155_s2 + $0x8] sm:$0xff] }
 0x1c9   :  { %3312 = vmatpush3.bf16.msra.mxu0 %v3309_v14  ;;  %v949_v19 = vrot.slane %v3749_v18, %v320_v20 }
 0x1ca   :  { %3314 = vmatprep.subr.bf16.mxu0 %v3313_v17 }
 0x1cd   :  { %3316 = vmatpush3.bf16.msra.mxu0 %v3313_v17 }
 0x1ce   :  { %3329 = vmatprep.subr.bf16.mxu0 %v3549_v44 }
 0x28f   :  { %v3024_v22 = vpop.f32.mrb[8].mxu0 }
 0x290   :  { %v418_v23 = vadd.f32 %v3024_v22, %v321_v21  ;;  %v412_v27 = vpop.f32.mrb[9].mxu0 }
 0x291   :  { %v413_v28 = vadd.f32 %v412_v27, %v321_v21 }
 0x292   :  { %v452_v30 = vmax.f32 %v418_v23, 0.0 }
 0x293   :  { %v451_v29 = vmax.f32 %v413_v28, 0.0  ;;  %v3027_v39 = vpop.f32.mrb[10].mxu0 }
 0x294   :  { %v428_v42 = vadd.f32 %v3027_v39, %v321_v21  ;;  %v422_v43 = vpop.f32.mrb[11].mxu0  ;;  %v703_v39 = vsub.s32 4, %v3636_v24 }
 0x295   :  { %3042 = vmatprep.mubr.msk.f32.mxu1 %vm176_vm1, %v451_v29  ;;  %v423_v48 = vadd.f32 %v422_v43, %v321_v21 }
 0x296   :  { %3043 = vmatmul.mubr.msk.f32.vlgmr.msra.gmra.mrb[8].mxu1 %vm176_vm1, %v452_v30  ;;  %v454_v50 = vmax.f32 %v428_v42, 0.0  ;;  %v3768_v41 = vrot.slane %v3642_v26, %v703_v39  ;;  %v3790_v26 = vrot.slane %v3749_v18, %v28_v25 }
 0x297   :  { %v3030_v49 = vpop.f32.mrb[12].mxu0  ;;  %3319 = vmatpush3.bf16.msra.mxu1 %v3702_v45  ;;  %v453_v53 = vmax.f32 %v423_v48, 0.0 }
 0x298   :  { %v438_v51 = vadd.f32 %v3030_v49, %v321_v21  ;;  %v432_v52 = vpop.f32.mrb[13].mxu0  ;;  %3320 = vmatprep.subr.bf16.mxu1 %v3549_v44 }
 0x299   :  { %v433_v54 = vadd.f32 %v432_v52, %v321_v21  ;;  %3045 = vmatprep.mubr.msk.f32.mxu1 %vm176_vm1, %v453_v53 }
 0x29a   :  { %v456_v61 = vmax.f32 %v438_v51, 0.0  ;;  %3046 = vmatmul.mubr.msk.f32.gmra.mrb[10].mxu1 %vm176_vm1, %v454_v50 }
 0x29b   :  { %v3033_v55 = vpop.f32.mrb[14].mxu0  ;;  %v455_v59 = vmax.f32 %v433_v54, 0.0  ;;  %3322 = vmatpush3.bf16.msra.mxu1 %v3712_v56 }
 0x29c   :  { %v442_v57 = vpop.f32.mrb[15].mxu0  ;;  %v448_v62 = vadd.f32 %v3033_v55, %v321_v21  ;;  %3323 = vmatprep.subr.bf16.mxu1 %v3549_v44 }
 0x29d   :  { %v443_v60 = vadd.f32 %v442_v57, %v321_v21  ;;  %3048 = vmatprep.mubr.msk.f32.mxu1 %vm176_vm1, %v455_v59 }
 0x29e   :  { %v458_v0 = vmax.f32 %v448_v62, 0.0  ;;  %3049 = vmatmul.mubr.msk.f32.gmra.mrb[12].mxu1 %vm176_vm1, %v456_v61 }
 0x29f   :  { %v457_v63 = vmax.f32 %v443_v60, 0.0 }
 0x2a1   :  { %3051 = vmatprep.mubr.msk.f32.mxu1 %vm176_vm1, %v457_v63 }
 0x2a2   :  { %3052 = vmatmul.mubr.msk.f32.gmra.mrb[14].mxu1 %vm176_vm1, %v458_v0 }
 0x2a3   :  { %3082 = vmatprep.mubr.msk.f32.mxu1 %vm3550_vm2, %v3551_v1 }
 0x2a6   :  { %3083 = vmatmul.mubr.f32.vlgmr.msra.gmra.mrb[16].mxu1 %v3551_v1 }
 0x2a7   :  { %3325 = vmatpush3.bf16.msra.mxu1 %v3702_v45  ;;  %3093 = vmatprep.mubr.msk.f32.mxu1 %vm3550_vm2, %v3551_v1 }
 0x2a8   :  { %3326 = vmatprep.subr.bf16.mxu1 %v3549_v44 }
 0x2ab   :  { %3328 = vmatpush3.bf16.msra.mxu1 %v3712_v56 }
 0x2ac   :  { %3335 = vmatprep.subr.bf16.mxu1 %v3549_v44 }
 0x369   :  { %v3044_v33 = vpop.f32.mrb[8].mxu1 }
 0x36a   :  { %v557_v34 = vpop.f32.mrb[9].mxu1  ;;  %v563_v36 = vadd.f32 %v3044_v33, %v3689_v32 }
 0x36b   :  { %v558_v35 = vadd.f32 %v557_v34, %v3689_v32 }
 0x36c   :  { %v599_v38 = vsel %vm176_vm1, %v563_v36, 0.0 }
 0x36d   :  { %v596_v37 = vsel %vm176_vm1, %v558_v35, 0.0  ;;  %v3755_v21 = vpop.f32.mrb[10].mxu1 }
 0x36e   :  { %597 = vadd.xlane.f32.xlu0 %v596_v37  ;;  %v3757_v22 = vpop.f32.mrb[11].mxu1 }
 0x371   :  { %v3759_v23 = vpop.f32.mrb[12].mxu1 }
 0x372   :  { %600 = vadd.xlane.f32.xlu0 %v599_v38  ;;  %v577_v27 = vpop.f32.mrb[13].mxu1  ;;  %v583_v14 = vadd.f32 %v3759_v23, %v3689_v32 }
 0x373   :  { %v578_v12 = vadd.f32 %v577_v27, %v3689_v32  ;;  %v568_v27 = vadd.f32 %v3757_v22, %v3689_v32 }
 0x374   :  { %v611_v16 = vsel %vm176_vm1, %v583_v14, 0.0 }
 0x375   :  { %v3761_v28 = vpop.f32.mrb[14].mxu1  ;;  %v608_v15 = vsel %vm176_vm1, %v578_v12, 0.0 }
 0x376   :  { %v3763_v29 = vpop.f32.mrb[15].mxu1 }
 0x379   :  { %v935_v30 = vpop.f32.mrb[16].mxu1 }
 0x37a   :  { %v3084_v33 = vpop.f32.mrb[17].mxu1 }
 0x37b   :  { %v602_v33 = vsel %vm176_vm1, %v568_v27, 0.0 }
 0x388   :  { %951 = vrot.lane.b32.xlu0 %v949_v19, %s3552_s21 }
 0x3fb   :  { %v598_v2 = vpop.xlane.xlu0 %597 }
 0x3fc   :  { %v621_v3 = vmul.f32 0.03125, %v598_v2 }
 0x3fe   :  { %v629_v4 = vsub.f32 %v558_v35, %v621_v3 }
 0x3ff   :  { %v601_v5 = vpop.xlane.xlu0 %600 }
 0x400   :  { %v622_v6 = vmul.f32 0.03125, %v601_v5  ;;  %v637_v7 = vmul.f32 %v629_v4, %v629_v4 }
 0x402   :  { %v630_v8 = vsub.f32 %v563_v36, %v622_v6  ;;  %v645_v9 = vsel %vm176_vm1, %v637_v7, 0.0 }
 0x403   :  { %646 = vadd.xlane.f32.xlu1 %v645_v9  ;;  %v3770_v43 = vpop.permute.xlu0 %951 }
 0x404   :  { %v638_v10 = vmul.f32 %v630_v8, %v630_v8  ;;  %v954_v48 = vadd.f32 %v3770_v43, %v935_v30 }
 0x406   :  { %v648_v11 = vsel %vm176_vm1, %v638_v10, 0.0 }
 0x407   :  { %649 = vadd.xlane.f32.xlu1 %v648_v11  ;;  %v573_v11 = vadd.f32 %v3755_v21, %v3689_v32 }
 0x409   :  { %v605_v13 = vsel %vm176_vm1, %v573_v11, 0.0 }
 0x418   :  { %956 = vrot.lane.b32.xlu1 %v954_v48, %s3552_s21 }
 0x490   :  { %v647_v34 = vpop.xlane.xlu1 %646 }
 0x491   :  { %v669_v35 = vmul.f32 0.03125, %v647_v34 }
 0x493   :  { %v677_v36 = vadd.f32 1e-05, %v669_v35 }
 0x494   :  { %v650_v20 = vpop.xlane.xlu1 %649 }
 0x495   :  { %3432 = vrsqrt.f32 %v677_v36  ;;  %v670_v37 = vmul.f32 0.03125, %v650_v20 }
 0x497   :  { %v678_v38 = vadd.f32 1e-05, %v670_v37 }
 0x498   :  { %v957_v0 = vpop.permute.xlu1 %956 }
 0x499   :  { %3434 = vrsqrt.f32 %v678_v38 }
 0x49f   :  { %v3433_v42 = vpop.eup %3432 }
 0x4a0   :  { %v693_v47 = vmul.f32 %v3433_v42, %v629_v4 }
 0x4a2   :  { %v705_v49 = vmul.f32 %v3768_v41, %v693_v47 }
 0x4a3   :  { %v3435_v50 = vpop.eup %3434 }
 0x4a4   :  { %v694_v51 = vmul.f32 %v3435_v50, %v630_v8  ;;  %v717_v52 = vadd.f32 %v3773_v46, %v705_v49 }
 0x4a6   :  { %v706_v53 = vmul.f32 %v3768_v41, %v694_v51  ;;  %3062 = vmatprep.mubr.msk.f32.mxu0 %vm176_vm1, %v717_v52 }
 0x4a8   :  { %v718_v54 = vadd.f32 %v3773_v46, %v706_v53 }
 0x4aa   :  { %3063 = vmatmul.mubr.msk.f32.vlgmr.msra.gmra.mrb[16].mxu0 %vm176_vm1, %v718_v54 }
 0x4ab   :  { %3331 = vmatpush3.bf16.msra.mxu0 %v3702_v45 }
 0x4ac   :  { %3332 = vmatprep.subr.bf16.mxu0 %v3549_v44 }
 0x4af   :  { %3334 = vmatpush3.bf16.msra.mxu0 %v3712_v56 }
 0x4b0   :  { %3341 = vmatprep.subr.bf16.mxu0 %v3549_v44 }
 0x57d   :  { %v3064_v55 = vpop.f32.mrb[16].mxu0 }
 0x57e   :  { %v827_v57 = vpop.f32.mrb[17].mxu0  ;;  %v833_v35 = vadd.f32 %v3064_v55, %v3790_v26 }
 0x57f   :  { %v828_v59 = vadd.f32 %v827_v57, %v3790_v26 }
 0x581   :  { %v939_v60 = vadd.f32 %v935_v30, %v828_v59  ;;  %v588_v30 = vadd.f32 %v3763_v29, %v3689_v32  ;;  %v593_v29 = vadd.f32 %v3761_v28, %v3689_v32 }
 0x583   :  { %v2784_v61 = vmul.f32 -1.442695, %v939_v60  ;;  %v614_v34 = vsel %vm176_vm1, %v588_v30, 0.0  ;;  %v617_v42 = vsel %vm176_vm1, %v593_v29, 0.0 }
 0x585   :  { %3436 = vpow2.f32 %v2784_v61 }
 0x58f   :  { %v3437_v62 = vpop.eup %3436 }
 0x590   :  { %v943_v63 = vadd.f32 1.0, %v3437_v62 }
 0x592   :  { %3438 = vrcp.f32 %v943_v63 }
 0x59c   :  { %v3439_v2 = vpop.eup %3438 }
 0x59d   :  { %v959_v3 = vmul.f32 %v3439_v2, %v957_v0  ;;  %v966_v6 = vsub.f32 1.0, %v3439_v2  ;;  %v972_v8 = vmul.f32 0.0, %v3439_v2 }
 0x59f   :  { %961 = vrot.lane.b32.xlu1 %v959_v3, %s3552_s21 }
 0x611   :  { %v962_v4 = vpop.permute.xlu1 %961 }
 0x612   :  { %v964_v5 = vadd.f32 %v962_v4, %v828_v59 }
 0x614   :  { %3440 = vtanh.f32 %v964_v5 }
 0x61e   :  { %v3441_v25 = vpop.eup %3440 }
 0x61f   :  { %968 = vrot.lane.b32.xlu1 %v3441_v25, %s3553_s22 }
 0x691   :  { %v969_v7 = vpop.permute.xlu1 %968 }
 0x692   :  { %v971_v9 = vmul.f32 %v969_v7, %v966_v6 }
 0x694   :  { %v3795_v10 = vadd.f32 %v972_v8, %v971_v9 }
 0x696   :  { %975 = vrot.lane.b32.xlu0 %v3795_v10, %s3553_s22 }
 0x6b5   :  { %606 = vadd.xlane.f32.xlu0 %v605_v13 }
 0x6b9   :  { %609 = vadd.xlane.f32.xlu0 %v608_v15 }
 0x6bd   :  { %612 = vadd.xlane.f32.xlu0 %v611_v16 }
 0x708   :  { %v3807_v17 = vpop.permute.xlu0 %975 }
 0x709   :  { %3094 = vmatmul.mubr.msk.f32.vlgmr.msra.gmra.mrb[18].mxu1 %vm176_vm1, %v3807_v17 }
 0x70a   :  { %3337 = vmatpush3.bf16.msra.mxu1 %v3702_v45  ;;  %3115 = vmatprep.mubr.msk.f32.mxu1 %vm3550_vm2, %v3551_v1 }
 0x70b   :  { %3338 = vmatprep.subr.bf16.mxu1 %v3549_v44 }
 0x70e   :  { %3340 = vmatpush3.bf16.msra.mxu1 %v3712_v56 }
 0x70f   :  { %3347 = vmatprep.subr.bf16.mxu1 %v3549_v44 }
 0x742   :  { %v607_v47 = vpop.xlane.xlu0 %606 }
 0x743   :  { %v624_v49 = vmul.f32 0.03125, %v607_v47 }
 0x745   :  { %v632_v52 = vsub.f32 %v573_v11, %v624_v49 }
 0x746   :  { %v610_v48 = vpop.xlane.xlu0 %609 }
 0x747   :  { %v625_v53 = vmul.f32 0.03125, %v610_v48  ;;  %v640_v62 = vmul.f32 %v632_v52, %v632_v52 }
 0x749   :  { %v633_v59 = vsub.f32 %v578_v12, %v625_v53  ;;  %v654_v28 = vsel %vm176_vm1, %v640_v62, 0.0 }
 0x74a   :  { %v613_v55 = vpop.xlane.xlu0 %612 }
 0x74b   :  { %v626_v60 = vmul.f32 0.03125, %v613_v55  ;;  %v641_v63 = vmul.f32 %v633_v59, %v633_v59 }
 0x74d   :  { %v634_v32 = vsub.f32 %v583_v14, %v626_v60  ;;  %v657_v0 = vsel %vm176_vm1, %v641_v63, 0.0 }
 0x74f   :  { %v642_v2 = vmul.f32 %v634_v32, %v634_v32 }
 0x751   :  { %v660_v3 = vsel %vm176_vm1, %v642_v2, 0.0 }
 0x7dc   :  { %v1045_v19 = vpop.f32.mrb[18].mxu1 }
 0x7dd   :  { %v1056_v21 = vadd.f32 %v1045_v19, %v3770_v43  ;;  %v3095_v23 = vpop.f32.mrb[19].mxu1  ;;  %v1049_v36 = vadd.f32 %v1045_v19, %v833_v35 }
 0x7df   :  { %1058 = vrot.lane.b32.xlu1 %v1056_v21, %s3552_s21  ;;  %v2786_v20 = vmul.f32 -1.442695, %v1049_v36 }
 0x7e1   :  { %3442 = vpow2.f32 %v2786_v20 }
 0x7eb   :  { %v3443_v37 = vpop.eup %3442 }
 0x7ec   :  { %v1053_v38 = vadd.f32 1.0, %v3443_v37 }
 0x7ee   :  { %3444 = vrcp.f32 %v1053_v38 }
 0x7f8   :  { %v3826_v39 = vpop.eup %3444 }
 0x803   :  { %603 = vadd.xlane.f32.xlu1 %v602_v33 }
 0x807   :  { %615 = vadd.xlane.f32.xlu1 %v614_v34 }
 0x851   :  { %v1059_v22 = vpop.permute.xlu1 %1058 }
 0x852   :  { %v1061_v40 = vmul.f32 %v3826_v39, %v1059_v22 }
 0x854   :  { %1063 = vrot.lane.b32.xlu0 %v1061_v40, %s3552_s21 }
 0x873   :  { %618 = vadd.xlane.f32.xlu0 %v617_v42 }
 0x890   :  { %v604_v50 = vpop.xlane.xlu1 %603 }
 0x891   :  { %v623_v51 = vmul.f32 0.03125, %v604_v50 }
 0x893   :  { %v631_v54 = vsub.f32 %v568_v27, %v623_v51 }
 0x894   :  { %v616_v6 = vpop.xlane.xlu1 %615 }
 0x895   :  { %v639_v57 = vmul.f32 %v631_v54, %v631_v54  ;;  %v627_v7 = vmul.f32 0.03125, %v616_v6 }
 0x897   :  { %v651_v61 = vsel %vm176_vm1, %v639_v57, 0.0  ;;  %v635_v8 = vsub.f32 %v588_v30, %v627_v7 }
 0x898   :  { %652 = vadd.xlane.f32.xlu0 %v651_v61  ;;  %v1068_v61 = vsub.f32 1.0, %v3826_v39 }
 0x899   :  { %v643_v9 = vmul.f32 %v635_v8, %v635_v8 }
 0x89b   :  { %v663_v11 = vsel %vm176_vm1, %v643_v9, 0.0 }
 0x89c   :  { %655 = vadd.xlane.f32.xlu0 %v654_v28 }
 0x8a0   :  { %658 = vadd.xlane.f32.xlu0 %v657_v0 }
 0x8a4   :  { %661 = vadd.xlane.f32.xlu0 %v660_v3 }
 0x8c6   :  { %v1064_v4 = vpop.permute.xlu0 %1063 }
 0x8c7   :  { %v1066_v5 = vadd.f32 %v1064_v4, %v833_v35 }
 0x8c9   :  { %3446 = vtanh.f32 %v1066_v5 }
 0x8d3   :  { %v3447_v25 = vpop.eup %3446 }
 0x8d4   :  { %1070 = vrot.lane.b32.xlu1 %v3447_v25, %s3553_s22 }
 0x8f8   :  { %664 = vadd.xlane.f32.xlu1 %v663_v11 }
 0x900   :  { %v619_v12 = vpop.xlane.xlu0 %618 }
 0x901   :  { %v628_v13 = vmul.f32 0.03125, %v619_v12 }
 0x903   :  { %v636_v14 = vsub.f32 %v593_v29, %v628_v13 }
 0x905   :  { %v644_v15 = vmul.f32 %v636_v14, %v636_v14 }
 0x907   :  { %v666_v16 = vsel %vm176_vm1, %v644_v15, 0.0 }
 0x908   :  { %667 = vadd.xlane.f32.xlu0 %v666_v16 }
 0x925   :  { %v653_v19 = vpop.xlane.xlu0 %652 }
 0x926   :  { %v671_v21 = vmul.f32 0.03125, %v653_v19 }
 0x928   :  { %v679_v23 = vadd.f32 1e-05, %v671_v21 }
 0x929   :  { %v656_v27 = vpop.xlane.xlu0 %655 }
 0x92a   :  { %3448 = vrsqrt.f32 %v679_v23  ;;  %v672_v33 = vmul.f32 0.03125, %v656_v27 }
 0x92c   :  { %v680_v34 = vadd.f32 1e-05, %v672_v33 }
 0x92d   :  { %v659_v35 = vpop.xlane.xlu0 %658 }
 0x92e   :  { %3450 = vrsqrt.f32 %v680_v34  ;;  %v673_v30 = vmul.f32 0.03125, %v659_v35 }
 0x930   :  { %v681_v36 = vadd.f32 1e-05, %v673_v30 }
 0x931   :  { %v662_v20 = vpop.xlane.xlu0 %661 }
 0x932   :  { %3452 = vrsqrt.f32 %v681_v36  ;;  %v674_v37 = vmul.f32 0.03125, %v662_v20 }
 0x934   :  { %v3449_v38 = vpop.eup %3448  ;;  %v682_v22 = vadd.f32 1e-05, %v674_v37 }
 0x935   :  { %v695_v40 = vmul.f32 %v3449_v38, %v631_v54 }
 0x936   :  { %3454 = vrsqrt.f32 %v682_v22 }
 0x937   :  { %v707_v29 = vmul.f32 %v3768_v41, %v695_v40 }
 0x938   :  { %v3451_v42 = vpop.eup %3450 }
 0x939   :  { %v719_v47 = vadd.f32 %v3773_v46, %v707_v29  ;;  %v696_v48 = vmul.f32 %v3451_v42, %v632_v52 }
 0x93b   :  { %3065 = vmatprep.mubr.msk.f32.mxu0 %vm176_vm1, %v719_v47  ;;  %v708_v49 = vmul.f32 %v3768_v41, %v696_v48 }
 0x93c   :  { %v3453_v50 = vpop.eup %3452 }
 0x93d   :  { %v720_v51 = vadd.f32 %v3773_v46, %v708_v49  ;;  %v697_v53 = vmul.f32 %v3453_v50, %v633_v59  ;;  %v1074_v59 = vmul.f32 %v3826_v39, %v3795_v10 }
 0x93f   :  { %3066 = vmatmul.mubr.msk.f32.gmra.mrb[18].mxu0 %vm176_vm1, %v720_v51  ;;  %v709_v55 = vmul.f32 %v3768_v41, %v697_v53 }
 0x940   :  { %v3455_v54 = vpop.eup %3454 }
 0x941   :  { %v721_v57 = vadd.f32 %v3773_v46, %v709_v55  ;;  %v698_v60 = vmul.f32 %v3455_v54, %v634_v32 }
 0x943   :  { %3068 = vmatprep.mubr.msk.f32.mxu0 %vm176_vm1, %v721_v57  ;;  %v710_v52 = vmul.f32 %v3768_v41, %v698_v60 }
 0x945   :  { %v722_v62 = vadd.f32 %v3773_v46, %v710_v52 }
 0x946   :  { %v1071_v28 = vpop.permute.xlu1 %1070 }
 0x947   :  { %v1073_v63 = vmul.f32 %v1071_v28, %v1068_v61  ;;  %3069 = vmatmul.mubr.msk.f32.gmra.mrb[20].mxu0 %vm176_vm1, %v722_v62 }
 0x949   :  { %v1075_v0 = vadd.f32 %v1074_v59, %v1073_v63 }
 0x94b   :  { %1077 = vrot.lane.b32.xlu0 %v1075_v0, %s3553_s22 }
 0x985   :  { %v665_v2 = vpop.xlane.xlu1 %664 }
 0x986   :  { %v675_v32 = vmul.f32 0.03125, %v665_v2 }
 0x988   :  { %v683_v3 = vadd.f32 1e-05, %v675_v32 }
 0x98a   :  { %3456 = vrsqrt.f32 %v683_v3 }
 0x994   :  { %v3457_v4 = vpop.eup %3456 }
 0x995   :  { %v668_v5 = vpop.xlane.xlu0 %667  ;;  %v699_v25 = vmul.f32 %v3457_v4, %v635_v8 }
 0x996   :  { %v676_v6 = vmul.f32 0.03125, %v668_v5 }
 0x997   :  { %v711_v7 = vmul.f32 %v3768_v41, %v699_v25 }
 0x998   :  { %v684_v9 = vadd.f32 1e-05, %v676_v6 }
 0x999   :  { %v723_v11 = vadd.f32 %v3773_v46, %v711_v7 }
 0x99a   :  { %3458 = vrsqrt.f32 %v684_v9 }
 0x99b   :  { %3071 = vmatprep.mubr.msk.f32.mxu0 %vm176_vm1, %v723_v11 }
 0x9a4   :  { %v3459_v10 = vpop.eup %3458 }
 0x9a5   :  { %v700_v39 = vmul.f32 %v3459_v10, %v636_v14 }
 0x9a7   :  { %v712_v12 = vmul.f32 %v3768_v41, %v700_v39 }
 0x9a9   :  { %v724_v13 = vadd.f32 %v3773_v46, %v712_v12 }
 0x9ab   :  { %3072 = vmatmul.mubr.msk.f32.gmra.mrb[22].mxu0 %vm176_vm1, %v724_v13 }
 0x9ac   :  { %3104 = vmatprep.mubr.msk.f32.mxu0 %vm3550_vm2, %v3551_v1 }
 0x9bd   :  { %v3864_v8 = vpop.permute.xlu0 %1077 }
 0x9be   :  { %3105 = vmatmul.mubr.msk.f32.vlgmr.msra.gmra.mrb[24].mxu0 %vm176_vm1, %v3864_v8 }
 0x9bf   :  { %3343 = vmatpush3.bf16.msra.mxu0 %v3702_v45  ;;  %3126 = vmatprep.mubr.msk.f32.mxu0 %vm3550_vm2, %v3551_v1 }
 0x9c0   :  { %3344 = vmatprep.subr.bf16.mxu0 %v3549_v44 }
 0x9c3   :  { %3346 = vmatpush3.bf16.msra.mxu0 %v3712_v56 }
 0x9c4   :  { %3353 = vmatprep.subr.bf16.mxu0 %v3549_v44 }
 0xa12   :  { %v3067_v41 = vpop.f32.mrb[18].mxu0 }
 0xa13   :  { %v837_v46 = vpop.f32.mrb[19].mxu0  ;;  %v843_v57 = vadd.f32 %v3067_v41, %v3790_v26 }
 0xa14   :  { %v838_v33 = vadd.f32 %v837_v46, %v3790_v26 }
 0xa1a   :  { %v3874_v14 = vpop.f32.mrb[20].mxu0 }
 0xa1b   :  { %v3876_v15 = vpop.f32.mrb[21].mxu0 }
 0xa1c   :  { %v848_v39 = vadd.f32 %v3876_v15, %v3790_v26 }
 0xa7e   :  { %v3878_v16 = vpop.f32.mrb[22].mxu0 }
 0xa7f   :  { %v3880_v19 = vpop.f32.mrb[23].mxu0 }
 0xa91   :  { %v1147_v21 = vpop.f32.mrb[24].mxu0 }
 0xa92   :  { %v1158_v23 = vadd.f32 %v1147_v21, %v3770_v43  ;;  %v3106_v27 = vpop.f32.mrb[25].mxu0  ;;  %v1151_v34 = vadd.f32 %v1147_v21, %v838_v33 }
 0xa94   :  { %1160 = vrot.lane.b32.xlu0 %v1158_v23, %s3552_s21  ;;  %v2788_v35 = vmul.f32 -1.442695, %v1151_v34 }
 0xa96   :  { %3460 = vpow2.f32 %v2788_v35 }
 0xaa0   :  { %v3461_v30 = vpop.eup %3460 }
 0xaa1   :  { %v1155_v36 = vadd.f32 1.0, %v3461_v30 }
 0xaa3   :  { %3462 = vrcp.f32 %v1155_v36 }
 0xaad   :  { %v3463_v20 = vpop.eup %3462 }
 0xaae   :  { %v1170_v42 = vsub.f32 1.0, %v3463_v20  ;;  %v1176_v48 = vmul.f32 %v3463_v20, %v1075_v0 }
 0xb06   :  { %v1161_v37 = vpop.permute.xlu0 %1160 }
 0xb07   :  { %v1163_v38 = vmul.f32 %v3463_v20, %v1161_v37 }
 0xb09   :  { %1165 = vrot.lane.b32.xlu0 %v1163_v38, %s3552_s21 }
 0xb7b   :  { %v1166_v22 = vpop.permute.xlu0 %1165 }
 0xb7c   :  { %v1168_v40 = vadd.f32 %v1166_v22, %v838_v33 }
 0xb7e   :  { %3464 = vtanh.f32 %v1168_v40 }
 0xb88   :  { %v3465_v29 = vpop.eup %3464 }
 0xb89   :  { %1172 = vrot.lane.b32.xlu1 %v3465_v29, %s3553_s22 }
 0xbfb   :  { %v1173_v47 = vpop.permute.xlu1 %1172 }
 0xbfc   :  { %v1175_v49 = vmul.f32 %v1173_v47, %v1170_v42  ;;  %v853_v42 = vadd.f32 %v3874_v14, %v3790_v26  ;;  %v1689_v14 = vld [vmem:[%s4153_s1 + $0xb8] sm:$0xff] }
 0xbfe   :  { %v1177_v50 = vadd.f32 %v1176_v48, %v1175_v49 }
 0xc00   :  { %1179 = vrot.lane.b32.xlu0 %v1177_v50, %s3553_s22 }
 0xc72   :  { %v3888_v51 = vpop.permute.xlu0 %1179 }
 0xc73   :  { %3116 = vmatmul.mubr.msk.f32.vlgmr.msra.gmra.mrb[20].mxu1 %vm176_vm1, %v3888_v51 }
 0xc74   :  { %3349 = vmatpush3.bf16.msra.mxu1 %v3702_v45  ;;  %3137 = vmatprep.mubr.msk.f32.mxu1 %vm3550_vm2, %v3551_v1 }
 0xc75   :  { %3350 = vmatprep.subr.bf16.mxu1 %v3549_v44 }
 0xc78   :  { %3352 = vmatpush3.bf16.msra.mxu1 %v3712_v56 }
 0xc79   :  { %3359 = vmatprep.subr.bf16.mxu1 %v3549_v44 }
 0xd46   :  { %v1249_v53 = vpop.f32.mrb[20].mxu1 }
 0xd47   :  { %v1260_v55 = vadd.f32 %v1249_v53, %v3770_v43  ;;  %v3117_v54 = vpop.f32.mrb[21].mxu1  ;;  %v1253_v60 = vadd.f32 %v1249_v53, %v843_v57 }
 0xd49   :  { %1262 = vrot.lane.b32.xlu0 %v1260_v55, %s3552_s21  ;;  %v2790_v52 = vmul.f32 -1.442695, %v1253_v60 }
 0xd4b   :  { %3466 = vpow2.f32 %v2790_v52 }
 0xd55   :  { %v3467_v61 = vpop.eup %3466 }
 0xd56   :  { %v1257_v62 = vadd.f32 1.0, %v3467_v61 }
 0xd58   :  { %3468 = vrcp.f32 %v1257_v62 }
 0xd62   :  { %v3469_v28 = vpop.eup %3468 }
 0xd63   :  { %v1272_v3 = vsub.f32 1.0, %v3469_v28  ;;  %v1278_v5 = vmul.f32 %v3469_v28, %v1177_v50 }
 0xdbb   :  { %v1263_v59 = vpop.permute.xlu0 %1262 }
 0xdbc   :  { %v1265_v63 = vmul.f32 %v3469_v28, %v1263_v59 }
 0xdbe   :  { %1267 = vrot.lane.b32.xlu0 %v1265_v63, %s3552_s21 }
 0xe30   :  { %v1268_v0 = vpop.permute.xlu0 %1267 }
 0xe31   :  { %v1270_v2 = vadd.f32 %v1268_v0, %v843_v57  ;;  %v1688_v57 = vld [vmem:[%s4153_s1 + $0xb0] sm:$0xff]  ;;  %v1690_v0 = vld [vmem:[%s4153_s1 + $0xc0] sm:$0xff] }
 0xe32   :  { %v3365_v60 = vpack.c.bf16 %v1689_v14, %v1688_v57 }
 0xe33   :  { %3470 = vtanh.f32 %v1270_v2  ;;  %v1691_v2 = vld [vmem:[%s4153_s1 + $0xc8] sm:$0xff] }
 0xe3d   :  { %v3471_v32 = vpop.eup %3470 }
 0xe3e   :  { %1274 = vrot.lane.b32.xlu0 %v3471_v32, %s3553_s22  ;;  %v3369_v32 = vpack.c.bf16 %v1691_v2, %v1690_v0 }
 0xeb0   :  { %v1275_v4 = vpop.permute.xlu0 %1274 }
 0xeb1   :  { %v1277_v25 = vmul.f32 %v1275_v4, %v1272_v3 }
 0xeb3   :  { %v1279_v6 = vadd.f32 %v1278_v5, %v1277_v25 }
 0xeb5   :  { %1281 = vrot.lane.b32.xlu0 %v1279_v6, %s3553_s22 }
 0xf27   :  { %v3904_v7 = vpop.permute.xlu0 %1281 }
 0xf28   :  { %3127 = vmatmul.mubr.msk.f32.vlgmr.msra.gmra.mrb[26].mxu0 %vm176_vm1, %v3904_v7 }
 0xf29   :  { %3355 = vmatpush3.bf16.msra.mxu0 %v3702_v45  ;;  %3148 = vmatprep.mubr.msk.f32.mxu0 %vm3550_vm2, %v3551_v1 }
 0xf2a   :  { %3356 = vmatprep.subr.bf16.mxu0 %v3549_v44 }
 0xf2d   :  { %3358 = vmatpush3.bf16.msra.mxu0 %v3712_v56 }
 0xf2e   :  { %3366 = vmatprep.subr.bf16.mxu0 %v3365_v60 }
 0xffb   :  { %v1351_v9 = vpop.f32.mrb[26].mxu0 }
 0xffc   :  { %v1362_v11 = vadd.f32 %v1351_v9, %v3770_v43  ;;  %v3128_v10 = vpop.f32.mrb[27].mxu0  ;;  %v1355_v12 = vadd.f32 %v1351_v9, %v848_v39 }
 0xffe   :  { %1364 = vrot.lane.b32.xlu1 %v1362_v11, %s3552_s21  ;;  %v2792_v13 = vmul.f32 -1.442695, %v1355_v12  ;;  %v858_v11 = vadd.f32 %v3880_v19, %v3790_v26  ;;  %v1692_v19 = vld [vmem:[%s4153_s1 + $0xf0] sm:$0xff] }
0x1000   :  { %3472 = vpow2.f32 %v2792_v13 }
0x100a   :  { %v3473_v41 = vpop.eup %3472 }
0x100b   :  { %v1359_v46 = vadd.f32 1.0, %v3473_v41 }
0x100d   :  { %3474 = vrcp.f32 %v1359_v46 }
0x1017   :  { %v3475_v21 = vpop.eup %3474 }
0x1018   :  { %v1374_v30 = vsub.f32 1.0, %v3475_v21  ;;  %v1380_v15 = vmul.f32 %v3475_v21, %v1279_v6 }
0x1070   :  { %v1365_v23 = vpop.permute.xlu1 %1364 }
0x1071   :  { %v1367_v27 = vmul.f32 %v3475_v21, %v1365_v23 }
0x1073   :  { %1369 = vrot.lane.b32.xlu0 %v1367_v27, %s3552_s21 }
0x10e5   :  { %v1370_v33 = vpop.permute.xlu0 %1369 }
0x10e6   :  { %v1372_v34 = vadd.f32 %v1370_v33, %v848_v39 }
0x10e8   :  { %3476 = vtanh.f32 %v1372_v34  ;;  %v1693_v34 = vld [vmem:[%s4153_s1 + $0xf8] sm:$0xff] }
0x10f2   :  { %v3477_v35 = vpop.eup %3476 }
0x10f3   :  { %1376 = vrot.lane.b32.xlu1 %v3477_v35, %s3553_s22  ;;  %v3980_v35 = vpack.c.bf16 %v1693_v34, %v1692_v19 }
0x1165   :  { %v1377_v36 = vpop.permute.xlu1 %1376 }
0x1166   :  { %v1379_v20 = vmul.f32 %v1377_v36, %v1374_v30  ;;  %v1694_v30 = vld [vmem:[%s4153_s1 + $0x100] sm:$0xff]  ;;  %v1695_v36 = vld [vmem:[%s4153_s1 + $0x108] sm:$0xff] }
0x1168   :  { %v1381_v37 = vadd.f32 %v1380_v15, %v1379_v20  ;;  %v3990_v15 = vpack.c.bf16 %v1695_v36, %v1694_v30 }
0x116a   :  { %1383 = vrot.lane.b32.xlu0 %v1381_v37, %s3553_s22 }
0x11dc   :  { %v1384_v38 = vpop.permute.xlu0 %1383 }
0x11dd   :  { %3138 = vmatmul.mubr.msk.f32.vlgmr.msra.gmra.mrb[22].mxu1 %vm176_vm1, %v1384_v38 }
0x11de   :  { %3361 = vmatpush3.bf16.msra.mxu1 %v3702_v45  ;;  %3159 = vmatprep.mubr.msk.f32.mxu1 %vm3550_vm2, %v3551_v1 }
0x11df   :  { %3362 = vmatprep.subr.bf16.mxu1 %v3549_v44 }
0x11e2   :  { %3364 = vmatpush3.bf16.msra.mxu1 %v3712_v56 }
0x11e3   :  { %3373 = vmatprep.subr.bf16.mxu1 %v3549_v44 }
0x12b0   :  { %v1453_v22 = vpop.f32.mrb[22].mxu1 }
0x12b1   :  { %v1464_v40 = vadd.f32 %v1453_v22, %v3770_v43  ;;  %v3139_v29 = vpop.f32.mrb[23].mxu1  ;;  %v1457_v47 = vadd.f32 %v1453_v22, %v853_v42 }
0x12b3   :  { %1466 = vrot.lane.b32.xlu1 %v1464_v40, %s3552_s21  ;;  %v2794_v45 = vmul.f32 -1.442695, %v1457_v47 }
0x12b5   :  { %3478 = vpow2.f32 %v2794_v45 }
0x12bf   :  { %v3479_v48 = vpop.eup %3478 }
0x12c0   :  { %v1461_v49 = vadd.f32 1.0, %v3479_v48 }
0x12c2   :  { %3480 = vrcp.f32 %v1461_v49 }
0x12cc   :  { %v3481_v50 = vpop.eup %3480 }
0x12cd   :  { %v1476_v61 = vsub.f32 1.0, %v3481_v50  ;;  %v1482_v28 = vmul.f32 %v3481_v50, %v1381_v37 }
0x1325   :  { %v1467_v53 = vpop.permute.xlu1 %1466 }
0x1326   :  { %v1469_v56 = vmul.f32 %v3481_v50, %v1467_v53  ;;  %v4024_v53 = vrot.slane %v3749_v18, %v174_v58 }
0x1328   :  { %1471 = vrot.lane.b32.xlu0 %v1469_v56, %s3552_s21 }
0x139a   :  { %v1472_v55 = vpop.permute.xlu0 %1471 }
0x139b   :  { %v1474_v54 = vadd.f32 %v1472_v55, %v853_v42 }
0x139d   :  { %3482 = vtanh.f32 %v1474_v54 }
0x13a7   :  { %v3483_v52 = vpop.eup %3482 }
0x13a8   :  { %1478 = vrot.lane.b32.xlu1 %v3483_v52, %s3553_s22 }
0x141a   :  { %v1479_v62 = vpop.permute.xlu1 %1478 }
0x141b   :  { %v1481_v59 = vmul.f32 %v1479_v62, %v1476_v61 }
0x141d   :  { %v1483_v63 = vadd.f32 %v1482_v28, %v1481_v59 }
0x141f   :  { %1485 = vrot.lane.b32.xlu0 %v1483_v63, %s3553_s22 }
0x1491   :  { %v1486_v3 = vpop.permute.xlu0 %1485 }
0x1492   :  { %3149 = vmatmul.mubr.msk.f32.vlgmr.msra.gmra.mrb[28].mxu0 %vm176_vm1, %v1486_v3 }
0x1493   :  { %3368 = vmatpush3.bf16.msra.mxu0 %v3365_v60  ;;  %3170 = vmatprep.mubr.msk.f32.mxu0 %vm176_vm1, %v3807_v17 }
0x1494   :  { %3370 = vmatprep.subr.bf16.mxu0 %v3369_v32 }
0x1497   :  { %3372 = vmatpush3.bf16.msra.mxu0 %v3369_v32 }
0x1498   :  { %3385 = vmatprep.subr.bf16.mxu0 %v3549_v44 }
0x149a   :  { %3171 = vmatmul.mubr.msk.f32.vlgmr.msra.gmra.mrb[30].mxu0 %vm176_vm1, %v3864_v8 }
0x149b   :  { %3173 = vmatprep.mubr.msk.f32.mxu0 %vm176_vm1, %v3888_v51  ;;  %3387 = vmatpush3.bf16.msra.mxu0 %v3980_v35 }
0x149c   :  { %3388 = vmatprep.subr.bf16.mxu0 %v3549_v44 }
0x149e   :  { %3174 = vmatmul.mubr.msk.f32.gmra.mrb[32].mxu0 %vm176_vm1, %v3904_v7 }
0x149f   :  { %3176 = vmatprep.mubr.msk.f32.mxu0 %vm176_vm1, %v1384_v38  ;;  %3390 = vmatpush3.bf16.msra.mxu0 %v3990_v15  ;;  %v1890_v38 = vrot.slane %v3749_v18, %v465_v31  ;;  %v863_v18 = vadd.f32 %v3878_v16, %v3790_v26 }
0x14a0   :  { %3397 = vmatprep.subr.bf16.mxu0 %v3549_v44 }
0x14a2   :  { %3177 = vmatmul.mubr.msk.f32.gmra.mrb[34].mxu0 %vm176_vm1, %v1486_v3 }
0x1565   :  { %v1555_v4 = vpop.f32.mrb[28].mxu0 }
0x1566   :  { %v1566_v17 = vadd.f32 %v1555_v4, %v3770_v43  ;;  %v3150_v5 = vpop.f32.mrb[29].mxu0  ;;  %v1559_v10 = vadd.f32 %v1555_v4, %v858_v11 }
0x1568   :  { %1568 = vrot.lane.b32.xlu1 %v1566_v17, %s3552_s21  ;;  %v2796_v39 = vmul.f32 -1.442695, %v1559_v10 }
0x156a   :  { %3484 = vpow2.f32 %v2796_v39 }
0x156d   :  { %v3960_v25 = vpop.f32.mrb[30].mxu0 }
0x156e   :  { %v1771_v6 = vpop.f32.mrb[31].mxu0  ;;  %v1777_v30 = vadd.f32 %v3960_v25, %v4024_v53 }
0x156f   :  { %v1772_v56 = vadd.f32 %v1771_v6, %v4024_v53 }
0x1571   :  { %v3962_v8 = vpop.f32.mrb[32].mxu0 }
0x1572   :  { %v3964_v9 = vpop.f32.mrb[33].mxu0 }
0x1574   :  { %v3485_v12 = vpop.eup %3484 }
0x1575   :  { %v3966_v51 = vpop.f32.mrb[34].mxu0  ;;  %v1563_v13 = vadd.f32 1.0, %v3485_v12 }
0x1576   :  { %v3968_v7 = vpop.f32.mrb[35].mxu0 }
0x1577   :  { %3486 = vrcp.f32 %v1563_v13 }
0x1581   :  { %v3487_v41 = vpop.eup %3486 }
0x1582   :  { %v1578_v20 = vsub.f32 1.0, %v3487_v41  ;;  %v1584_v22 = vmul.f32 %v3487_v41, %v1483_v63 }
0x15da   :  { %v1569_v46 = vpop.permute.xlu1 %1568 }
0x15db   :  { %v1571_v21 = vmul.f32 %v3487_v41, %v1569_v46 }
0x15dd   :  { %1573 = vrot.lane.b32.xlu0 %v1571_v21, %s3552_s21 }
0x164f   :  { %v1574_v23 = vpop.permute.xlu0 %1573 }
0x1650   :  { %v1576_v27 = vadd.f32 %v1574_v23, %v858_v11 }
0x1652   :  { %3488 = vtanh.f32 %v1576_v27 }
0x165c   :  { %v3489_v33 = vpop.eup %3488 }
0x165d   :  { %1580 = vrot.lane.b32.xlu1 %v3489_v33, %s3553_s22 }
0x1661   :  { %1892 = vrot.lane.b32.xlu1 %v1890_v38, %s3552_s21 }
0x16cf   :  { %v1581_v37 = vpop.permute.xlu1 %1580 }
0x16d0   :  { %v1583_v40 = vmul.f32 %v1581_v37, %v1578_v20 }
0x16d2   :  { %v3998_v29 = vadd.f32 %v1584_v22, %v1583_v40 }
0x16d3   :  { %v4017_v45 = vpop.permute.xlu1 %1892 }
0x16d4   :  { %1587 = vrot.lane.b32.xlu0 %v3998_v29, %s3553_s22 }
0x1746   :  { %v1588_v42 = vpop.permute.xlu0 %1587 }
0x1747   :  { %3160 = vmatmul.mubr.msk.f32.vlgmr.msra.gmra.mrb[24].mxu1 %vm176_vm1, %v1588_v42  ;;  %3179 = vmatprep.mubr.msk.f32.mxu0 %vm176_vm1, %v1588_v42 }
0x1748   :  { %3375 = vmatpush3.bf16.msra.mxu1 %v3980_v35  ;;  %3190 = vmatprep.mubr.msk.f32.mxu1 %vm3550_vm2, %v3551_v1 }
0x1749   :  { %3376 = vmatprep.subr.bf16.mxu1 %v3549_v44 }
0x174c   :  { %3378 = vmatpush3.bf16.msra.mxu1 %v3990_v15 }
0x174d   :  { %3379 = vmatprep.subr.bf16.mxu1 %v3549_v44 }
0x174f   :  { %3191 = vmatmul.mubr.f32.vlgmr.msra.gmra.mrb[26].mxu1 %v3551_v1 }
0x1750   :  { %3381 = vmatpush3.bf16.msra.mxu1 %v3980_v35  ;;  %3201 = vmatprep.mubr.msk.f32.mxu1 %vm3550_vm2, %v3551_v1 }
0x1751   :  { %3382 = vmatprep.subr.bf16.mxu1 %v3549_v44 }
0x1754   :  { %3384 = vmatpush3.bf16.msra.mxu1 %v3990_v15 }
0x1755   :  { %3391 = vmatprep.subr.bf16.mxu1 %v3549_v44 }
0x181a   :  { %v1657_v31 = vpop.f32.mrb[24].mxu1 }
0x181b   :  { %v3161_v47 = vpop.f32.mrb[25].mxu1  ;;  %v1668_v58 = vadd.f32 %v1657_v31, %v3770_v43  ;;  %v1661_v63 = vadd.f32 %v1657_v31, %v863_v18 }
0x181d   :  { %v2798_v0 = vmul.f32 -1.442695, %v1661_v63 }
0x1822   :  { %v1876_v48 = vpop.f32.mrb[26].mxu1 }
0x1823   :  { %v3192_v49 = vpop.f32.mrb[27].mxu1  ;;  %v1895_v50 = vadd.f32 %v4017_v45, %v1876_v48  ;;  %v1880_v55 = vadd.f32 %v1876_v48, %v1772_v56 }
0x1825   :  { %1897 = vrot.lane.b32.xlu0 %v1895_v50, %s3552_s21  ;;  %v2807_v54 = vmul.f32 -1.442695, %v1880_v55 }
0x1827   :  { %3490 = vpow2.f32 %v2807_v54 }
0x1831   :  { %v3491_v57 = vpop.eup %3490 }
0x1832   :  { %v1884_v14 = vadd.f32 1.0, %v3491_v57 }
0x1834   :  { %3492 = vrcp.f32 %v1884_v14 }
0x183e   :  { %v3493_v60 = vpop.eup %3492 }
0x183f   :  { %v1907_v3 = vsub.f32 1.0, %v3493_v60  ;;  %v1913_v17 = vmul.f32 0.0, %v3493_v60 }
0x1897   :  { %v1898_v52 = vpop.permute.xlu0 %1897 }
0x1898   :  { %v1900_v61 = vmul.f32 %v3493_v60, %v1898_v52 }
0x189a   :  { %1902 = vrot.lane.b32.xlu1 %v1900_v61, %s3552_s21  ;;  %v1782_v61 = vadd.f32 %v3964_v9, %v4024_v53 }
0x190c   :  { %v1903_v62 = vpop.permute.xlu1 %1902 }
0x190d   :  { %v1905_v28 = vadd.f32 %v1903_v62, %v1772_v56 }
0x190f   :  { %3494 = vtanh.f32 %v1905_v28 }
0x1910   :  { %3496 = vpow2.f32 %v2798_v0 }
0x1919   :  { %v3495_v59 = vpop.eup %3494 }
0x191a   :  { %1909 = vrot.lane.b32.xlu0 %v3495_v59, %s3553_s22  ;;  %v3497_v2 = vpop.eup %3496 }
0x191b   :  { %v1665_v32 = vadd.f32 1.0, %v3497_v2 }
0x191d   :  { %3498 = vrcp.f32 %v1665_v32 }
0x191e   :  { %1670 = vrot.lane.b32.xlu0 %v1668_v58, %s3552_s21 }
0x1927   :  { %v3499_v11 = vpop.eup %3498 }
0x1928   :  { %v1680_v13 = vsub.f32 1.0, %v3499_v11  ;;  %v1686_v46 = vmul.f32 %v3499_v11, %v3998_v29 }
0x198c   :  { %v1910_v4 = vpop.permute.xlu0 %1909 }
0x198d   :  { %v1912_v5 = vmul.f32 %v1910_v4, %v1907_v3 }
0x198f   :  { %v1914_v6 = vadd.f32 %v1913_v17, %v1912_v5 }
0x1990   :  { %v1671_v10 = vpop.permute.xlu0 %1670 }
0x1991   :  { %v1673_v39 = vmul.f32 %v3499_v11, %v1671_v10  ;;  %1916 = vrot.lane.b32.xlu1 %v1914_v6, %s3553_s22 }
0x1993   :  { %1675 = vrot.lane.b32.xlu0 %v1673_v39, %s3552_s21 }
0x1a03   :  { %v1917_v43 = vpop.permute.xlu1 %1916 }
0x1a04   :  { %3202 = vmatmul.mubr.msk.f32.vlgmr.msra.gmra.mrb[28].mxu1 %vm176_vm1, %v1917_v43 }
0x1a05   :  { %v1676_v26 = vpop.permute.xlu0 %1675  ;;  %3393 = vmatpush3.bf16.msra.mxu1 %v3980_v35  ;;  %3223 = vmatprep.mubr.msk.f32.mxu1 %vm3550_vm2, %v3551_v1 }
0x1a06   :  { %v1678_v16 = vadd.f32 %v1676_v26, %v863_v18  ;;  %3394 = vmatprep.subr.bf16.mxu1 %v3549_v44  ;;  %v1787_v26 = vadd.f32 %v3962_v8, %v4024_v53 }
0x1a08   :  { %3500 = vtanh.f32 %v1678_v16 }
0x1a09   :  { %3396 = vmatpush3.bf16.msra.mxu1 %v3990_v15 }
0x1a0a   :  { %3403 = vmatprep.subr.bf16.mxu1 %v3549_v44 }
0x1a12   :  { %v3501_v12 = vpop.eup %3500 }
0x1a13   :  { %1682 = vrot.lane.b32.xlu0 %v3501_v12, %s3553_s22 }
0x1a85   :  { %v1683_v41 = vpop.permute.xlu0 %1682 }
0x1a86   :  { %v1685_v21 = vmul.f32 %v1683_v41, %v1680_v13 }
0x1a88   :  { %v1687_v23 = vadd.f32 %v1686_v46, %v1685_v21 }
0x1a8a   :  { %1701 = vrot.lane.b32.xlu0 %v1687_v23, %s3553_s22 }
0x1ad7   :  { %v1986_v27 = vpop.f32.mrb[28].mxu1 }
0x1ad8   :  { %v1997_v33 = vadd.f32 %v1986_v27, %v4017_v45  ;;  %v3203_v19 = vpop.f32.mrb[29].mxu1  ;;  %v1990_v36 = vadd.f32 %v1986_v27, %v1777_v30 }
0x1ada   :  { %1999 = vrot.lane.b32.xlu1 %v1997_v33, %s3552_s21  ;;  %v2809_v20 = vmul.f32 -1.442695, %v1990_v36 }
0x1adc   :  { %3502 = vpow2.f32 %v2809_v20 }
0x1ae6   :  { %v3503_v37 = vpop.eup %3502 }
0x1ae7   :  { %v1994_v38 = vadd.f32 1.0, %v3503_v37 }
0x1ae9   :  { %3504 = vrcp.f32 %v1994_v38 }
0x1af3   :  { %v3505_v22 = vpop.eup %3504 }
0x1af4   :  { %v2009_v49 = vsub.f32 1.0, %v3505_v22  ;;  %v2015_v56 = vmul.f32 %v3505_v22, %v1914_v6 }
0x1afc   :  { %v1702_v34 = vpop.permute.xlu0 %1701 }
0x1afd   :  { %3180 = vmatmul.mubr.msk.f32.gmra.mrb[36].mxu0 %vm176_vm1, %v1702_v34 }
0x1afe   :  { %3212 = vmatprep.mubr.msk.f32.mxu0 %vm3550_vm2, %v3551_v1 }
0x1b4c   :  { %v2000_v40 = vpop.permute.xlu1 %1999 }
0x1b4d   :  { %v2002_v29 = vmul.f32 %v3505_v22, %v2000_v40 }
0x1b4f   :  { %2004 = vrot.lane.b32.xlu1 %v2002_v29, %s3552_s21  ;;  %v1792_v29 = vadd.f32 %v3968_v7, %v4024_v53 }
0x1bc1   :  { %v2005_v42 = vpop.permute.xlu1 %2004 }
0x1bc2   :  { %v2007_v31 = vadd.f32 %v2005_v42, %v1777_v30 }
0x1bc4   :  { %3506 = vtanh.f32 %v2007_v31 }
0x1bce   :  { %v3507_v47 = vpop.eup %3506 }
0x1bcf   :  { %2011 = vrot.lane.b32.xlu1 %v3507_v47, %s3553_s22 }
0x1bd0   :  { %v4054_v48 = vpop.f32.mrb[36].mxu0 }
0x1bd1   :  { %v4056_v25 = vpop.f32.mrb[37].mxu0 }
0x1c41   :  { %v2012_v50 = vpop.permute.xlu1 %2011 }
0x1c42   :  { %v2014_v55 = vmul.f32 %v2012_v50, %v2009_v49 }
0x1c44   :  { %v2016_v54 = vadd.f32 %v2015_v56, %v2014_v55 }
0x1c46   :  { %2018 = vrot.lane.b32.xlu1 %v2016_v54, %s3553_s22 }
0x1cb8   :  { %v2019_v57 = vpop.permute.xlu1 %2018 }
0x1cb9   :  { %3213 = vmatmul.mubr.msk.f32.vlgmr.msra.gmra.mrb[38].mxu0 %vm176_vm1, %v2019_v57 }
0x1cba   :  { %3399 = vmatpush3.bf16.msra.mxu0 %v3980_v35  ;;  %3234 = vmatprep.mubr.msk.f32.mxu0 %vm3550_vm2, %v3551_v1 }
0x1cbb   :  { %3400 = vmatprep.subr.bf16.mxu0 %v3549_v44 }
0x1cbe   :  { %3402 = vmatpush3.bf16.msra.mxu0 %v3990_v15 }
0x1cbf   :  { %3409 = vmatprep.subr.bf16.mxu0 %v3549_v44 }
0x1d8c   :  { %v2088_v14 = vpop.f32.mrb[38].mxu0 }
0x1d8d   :  { %v2099_v60 = vadd.f32 %v2088_v14, %v4017_v45  ;;  %v3214_v52 = vpop.f32.mrb[39].mxu0  ;;  %v2092_v62 = vadd.f32 %v2088_v14, %v1782_v61 }
0x1d8f   :  { %2101 = vrot.lane.b32.xlu0 %v2099_v60, %s3552_s21  ;;  %v2811_v28 = vmul.f32 -1.442695, %v2092_v62 }
0x1d91   :  { %3508 = vpow2.f32 %v2811_v28 }
0x1d9b   :  { %v3509_v59 = vpop.eup %3508 }
0x1d9c   :  { %v2096_v58 = vadd.f32 1.0, %v3509_v59 }
0x1d9e   :  { %3510 = vrcp.f32 %v2096_v58 }
0x1da8   :  { %v3511_v18 = vpop.eup %3510 }
0x1da9   :  { %v2111_v4 = vsub.f32 1.0, %v3511_v18  ;;  %v2117_v9 = vmul.f32 %v3511_v18, %v2016_v54 }
0x1e01   :  { %v2102_v63 = vpop.permute.xlu0 %2101 }
0x1e02   :  { %v2104_v0 = vmul.f32 %v3511_v18, %v2102_v63  ;;  %v1797_v63 = vadd.f32 %v3966_v51, %v4024_v53 }
0x1e04   :  { %2106 = vrot.lane.b32.xlu1 %v2104_v0, %s3552_s21 }
0x1e76   :  { %v2107_v2 = vpop.permute.xlu1 %2106 }
0x1e77   :  { %v2109_v32 = vadd.f32 %v2107_v2, %v1782_v61 }
0x1e79   :  { %3512 = vtanh.f32 %v2109_v32 }
0x1e83   :  { %v3513_v3 = vpop.eup %3512 }
0x1e84   :  { %2113 = vrot.lane.b32.xlu0 %v3513_v3, %s3553_s22 }
0x1ef6   :  { %v2114_v17 = vpop.permute.xlu0 %2113 }
0x1ef7   :  { %v2116_v5 = vmul.f32 %v2114_v17, %v2111_v4 }
0x1ef9   :  { %v2118_v6 = vadd.f32 %v2117_v9, %v2116_v5 }
0x1efb   :  { %2120 = vrot.lane.b32.xlu1 %v2118_v6, %s3553_s22 }
0x1f6d   :  { %v2121_v11 = vpop.permute.xlu1 %2120 }
0x1f6e   :  { %3224 = vmatmul.mubr.msk.f32.vlgmr.msra.gmra.mrb[30].mxu1 %vm176_vm1, %v2121_v11 }
0x1f6f   :  { %3405 = vmatpush3.bf16.msra.mxu1 %v3980_v35  ;;  %3245 = vmatprep.mubr.msk.f32.mxu1 %vm3550_vm2, %v3551_v1 }
0x1f70   :  { %3406 = vmatprep.subr.bf16.mxu1 %v3549_v44 }
0x1f73   :  { %3408 = vmatpush3.bf16.msra.mxu1 %v3990_v15 }
0x1f74   :  { %3415 = vmatprep.subr.bf16.mxu1 %v3549_v44 }
0x2041   :  { %v2190_v10 = vpop.f32.mrb[30].mxu1 }
0x2042   :  { %v2201_v39 = vadd.f32 %v2190_v10, %v4017_v45  ;;  %v3225_v43 = vpop.f32.mrb[31].mxu1  ;;  %v2194_v16 = vadd.f32 %v2190_v10, %v1787_v26 }
0x2044   :  { %2203 = vrot.lane.b32.xlu0 %v2201_v39, %s3552_s21  ;;  %v2813_v12 = vmul.f32 -1.442695, %v2194_v16 }
0x2046   :  { %3514 = vpow2.f32 %v2813_v12 }
0x2050   :  { %v3515_v13 = vpop.eup %3514 }
0x2051   :  { %v2198_v41 = vadd.f32 1.0, %v3515_v13  ;;  %v1802_v13 = vadd.f32 %v4056_v25, %v4024_v53 }
0x2053   :  { %3516 = vrcp.f32 %v2198_v41 }
0x205d   :  { %v3517_v46 = vpop.eup %3516 }
0x205e   :  { %v2213_v34 = vsub.f32 1.0, %v3517_v46  ;;  %v2219_v8 = vmul.f32 %v3517_v46, %v2118_v6 }
0x20b6   :  { %v2204_v21 = vpop.permute.xlu0 %2203 }
0x20b7   :  { %v2206_v23 = vmul.f32 %v3517_v46, %v2204_v21 }
0x20b9   :  { %2208 = vrot.lane.b32.xlu1 %v2206_v23, %s3552_s21 }
0x212b   :  { %v2209_v27 = vpop.permute.xlu1 %2208 }
0x212c   :  { %v2211_v33 = vadd.f32 %v2209_v27, %v1787_v26 }
0x212e   :  { %3518 = vtanh.f32 %v2211_v33 }
0x2138   :  { %v3519_v19 = vpop.eup %3518 }
0x2139   :  { %2215 = vrot.lane.b32.xlu0 %v3519_v19, %s3553_s22 }
0x21ab   :  { %v2216_v30 = vpop.permute.xlu0 %2215 }
0x21ac   :  { %v2218_v36 = vmul.f32 %v2216_v30, %v2213_v34 }
0x21ae   :  { %v2220_v20 = vadd.f32 %v2219_v8, %v2218_v36 }
0x21b0   :  { %2222 = vrot.lane.b32.xlu1 %v2220_v20, %s3553_s22 }
0x2222   :  { %v2223_v37 = vpop.permute.xlu1 %2222 }
0x2223   :  { %3235 = vmatmul.mubr.msk.f32.vlgmr.msra.gmra.mrb[40].mxu0 %vm176_vm1, %v2223_v37 }
0x2224   :  { %3411 = vmatpush3.bf16.msra.mxu0 %v3980_v35  ;;  %3256 = vmatprep.mubr.msk.f32.mxu0 %vm3550_vm2, %v3551_v1 }
0x2225   :  { %3412 = vmatprep.subr.bf16.mxu0 %v3549_v44 }
0x2228   :  { %3414 = vmatpush3.bf16.msra.mxu0 %v3990_v15 }
0x2229   :  { %3421 = vmatprep.subr.bf16.mxu0 %v3549_v44 }
0x22f6   :  { %v2292_v38 = vpop.f32.mrb[40].mxu0 }
0x22f7   :  { %v2303_v22 = vadd.f32 %v2292_v38, %v4017_v45  ;;  %v3236_v40 = vpop.f32.mrb[41].mxu0  ;;  %v2296_v42 = vadd.f32 %v2292_v38, %v1792_v29 }
0x22f9   :  { %2305 = vrot.lane.b32.xlu0 %v2303_v22, %s3552_s21  ;;  %v2815_v31 = vmul.f32 -1.442695, %v2296_v42  ;;  %v1807_v42 = vadd.f32 %v4054_v48, %v4024_v53  ;;  %v2656_v53 = vld [vmem:[%s4153_s1 + $0x70] sm:$0xff]  ;;  %v2657_v48 = vld [vmem:[%s4153_s1 + $0x78] sm:$0xff] }
0x22fb   :  { %3520 = vpow2.f32 %v2815_v31 }
0x2305   :  { %v3521_v47 = vpop.eup %3520 }
0x2306   :  { %v2300_v49 = vadd.f32 1.0, %v3521_v47 }
0x2308   :  { %3522 = vrcp.f32 %v2300_v49 }
0x2312   :  { %v3523_v50 = vpop.eup %3522 }
0x2313   :  { %v2315_v60 = vsub.f32 1.0, %v3523_v50  ;;  %v2321_v7 = vmul.f32 %v3523_v50, %v2220_v20 }
0x236b   :  { %v2306_v56 = vpop.permute.xlu0 %2305 }
0x236c   :  { %v2308_v55 = vmul.f32 %v3523_v50, %v2306_v56 }
0x236e   :  { %2310 = vrot.lane.b32.xlu1 %v2308_v55, %s3552_s21 }
0x23e0   :  { %v2311_v54 = vpop.permute.xlu1 %2310 }
0x23e1   :  { %v2313_v57 = vadd.f32 %v2311_v54, %v1792_v29 }
0x23e3   :  { %3524 = vtanh.f32 %v2313_v57 }
0x23ed   :  { %v3525_v14 = vpop.eup %3524 }
0x23ee   :  { %2317 = vrot.lane.b32.xlu0 %v3525_v14, %s3553_s22 }
0x2460   :  { %v2318_v52 = vpop.permute.xlu0 %2317 }
0x2461   :  { %v2320_v61 = vmul.f32 %v2318_v52, %v2315_v60  ;;  %v2658_v60 = vld [vmem:[%s4153_s1 + $0x80] sm:$0xff]  ;;  %v3422_v52 = vpack.c.bf16 %v2657_v48, %v2656_v53 }
0x2463   :  { %v2322_v62 = vadd.f32 %v2321_v7, %v2320_v61  ;;  %v2659_v7 = vld [vmem:[%s4153_s1 + $0x88] sm:$0xff] }
0x2464   :  { %v3425_v61 = vpack.c.bf16 %v2659_v7, %v2658_v60 }
0x2465   :  { %2324 = vrot.lane.b32.xlu1 %v2322_v62, %s3553_s22 }
0x24d7   :  { %v2325_v28 = vpop.permute.xlu1 %2324 }
0x24d8   :  { %3246 = vmatmul.mubr.msk.f32.vlgmr.msra.gmra.mrb[32].mxu1 %vm176_vm1, %v2325_v28 }
0x24d9   :  { %3417 = vmatpush3.bf16.msra.mxu1 %v3980_v35  ;;  %3267 = vmatprep.mubr.msk.f32.mxu1 %vm3550_vm2, %v3551_v1 }
0x24da   :  { %3418 = vmatprep.subr.bf16.mxu1 %v3549_v44 }
0x24dd   :  { %3420 = vmatpush3.bf16.msra.mxu1 %v3990_v15 }
0x25ab   :  { %v2394_v59 = vpop.f32.mrb[32].mxu1 }
0x25ac   :  { %v2405_v58 = vadd.f32 %v2394_v59, %v4017_v45  ;;  %v3247_v18 = vpop.f32.mrb[33].mxu1  ;;  %v2398_v0 = vadd.f32 %v2394_v59, %v1797_v63 }
0x25ae   :  { %2407 = vrot.lane.b32.xlu0 %v2405_v58, %s3552_s21  ;;  %v2817_v2 = vmul.f32 -1.442695, %v2398_v0 }
0x25b0   :  { %3526 = vpow2.f32 %v2817_v2 }
0x25ba   :  { %v3527_v35 = vpop.eup %3526 }
0x25bb   :  { %v2402_v32 = vadd.f32 1.0, %v3527_v35 }
0x25bd   :  { %3528 = vrcp.f32 %v2402_v32 }
0x25c7   :  { %v3529_v3 = vpop.eup %3528 }
0x25c8   :  { %v2417_v6 = vsub.f32 1.0, %v3529_v3  ;;  %v2423_v51 = vmul.f32 %v3529_v3, %v2322_v62 }
0x2620   :  { %v2408_v4 = vpop.permute.xlu0 %2407 }
0x2621   :  { %v2410_v17 = vmul.f32 %v3529_v3, %v2408_v4 }
0x2623   :  { %2412 = vrot.lane.b32.xlu1 %v2410_v17, %s3552_s21 }
0x2695   :  { %v2413_v15 = vpop.permute.xlu1 %2412 }
0x2696   :  { %v2415_v9 = vadd.f32 %v2413_v15, %v1797_v63 }
0x2698   :  { %3530 = vtanh.f32 %v2415_v9 }
0x26a2   :  { %v3531_v5 = vpop.eup %3530 }
0x26a3   :  { %2419 = vrot.lane.b32.xlu0 %v3531_v5, %s3553_s22 }
0x2715   :  { %v2420_v11 = vpop.permute.xlu0 %2419 }
0x2716   :  { %v2422_v10 = vmul.f32 %v2420_v11, %v2417_v6 }
0x2718   :  { %v2424_v39 = vadd.f32 %v2423_v51, %v2422_v10 }
0x271a   :  { %2426 = vrot.lane.b32.xlu1 %v2424_v39, %s3553_s22 }
0x278c   :  { %v2427_v43 = vpop.permute.xlu1 %2426 }
0x278d   :  { %3257 = vmatmul.mubr.msk.f32.vlgmr.msra.gmra.mrb[42].mxu0 %vm176_vm1, %v2427_v43 }
0x278e   :  { %3278 = vmatprep.mubr.msk.f32.mxu0 %vm3550_vm2, %v3551_v1  ;;  %3423 = vmatpush3.bf16.msra.mxu0 %v3422_v52 }
0x278f   :  { %3424 = vmatprep.subr.bf16.mxu0 %v3549_v44 }
0x2792   :  { %3426 = vmatpush3.bf16.msra.mxu0 %v3425_v61 }
0x2860   :  { %v2496_v26 = vpop.f32.mrb[42].mxu0 }
0x2861   :  { %v2507_v16 = vadd.f32 %v2496_v26, %v4017_v45  ;;  %v3258_v12 = vpop.f32.mrb[43].mxu0  ;;  %v2500_v41 = vadd.f32 %v2496_v26, %v1802_v13 }
0x2863   :  { %2509 = vrot.lane.b32.xlu0 %v2507_v16, %s3552_s21  ;;  %v2819_v46 = vmul.f32 -1.442695, %v2500_v41 }
0x2865   :  { %3532 = vpow2.f32 %v2819_v46 }
0x286f   :  { %v3533_v21 = vpop.eup %3532 }
0x2870   :  { %v2504_v23 = vadd.f32 1.0, %v3533_v21 }
0x2872   :  { %3534 = vrcp.f32 %v2504_v23 }
0x287c   :  { %v3535_v27 = vpop.eup %3534 }
0x287d   :  { %v2519_v8 = vsub.f32 1.0, %v3535_v27  ;;  %v2525_v25 = vmul.f32 %v3535_v27, %v2424_v39 }
0x28d5   :  { %v2510_v33 = vpop.permute.xlu0 %2509 }
0x28d6   :  { %v2512_v19 = vmul.f32 %v3535_v27, %v2510_v33  ;;  %v2662_v27 = vsub.s32 6, %v3636_v24  ;;  %v3548_v33 = vld [vmem:[%s4155_s2] sm:$0xff] }
0x28d8   :  { %2514 = vrot.lane.b32.xlu1 %v2512_v19, %s3552_s21  ;;  %v2663_v19 = vrot.slane %v3548_v33, %v2662_v27 }
0x294a   :  { %v2515_v1 = vpop.permute.xlu1 %2514 }
0x294b   :  { %v2517_v34 = vadd.f32 %v2515_v1, %v1802_v13 }
0x294d   :  { %3536 = vtanh.f32 %v2517_v34 }
0x2957   :  { %v3537_v30 = vpop.eup %3536 }
0x2958   :  { %2521 = vrot.lane.b32.xlu0 %v3537_v30, %s3553_s22 }
0x29ca   :  { %v2522_v36 = vpop.permute.xlu0 %2521 }
0x29cb   :  { %v2524_v20 = vmul.f32 %v2522_v36, %v2519_v8 }
0x29cd   :  { %v2526_v37 = vadd.f32 %v2525_v25, %v2524_v20 }
0x29cf   :  { %2528 = vrot.lane.b32.xlu1 %v2526_v37, %s3553_s22 }
0x2a41   :  { %v2529_v38 = vpop.permute.xlu1 %2528 }
0x2a42   :  { %3268 = vmatmul.mubr.msk.f32.vlgmr.msra.gmra.mrb[34].mxu1 %vm176_vm1, %v2529_v38 }
0x2b15   :  { %v2598_v22 = vpop.f32.mrb[34].mxu1 }
0x2b16   :  { %v2609_v40 = vadd.f32 %v2598_v22, %v4017_v45  ;;  %v3269_v29 = vpop.f32.mrb[35].mxu1  ;;  %v2602_v31 = vadd.f32 %v2598_v22, %v1807_v42 }
0x2b18   :  { %2611 = vrot.lane.b32.xlu0 %v2609_v40, %s3552_s21  ;;  %v2821_v47 = vmul.f32 -1.442695, %v2602_v31 }
0x2b1a   :  { %3538 = vpow2.f32 %v2821_v47 }
0x2b24   :  { %v3539_v49 = vpop.eup %3538 }
0x2b25   :  { %v2606_v50 = vadd.f32 1.0, %v3539_v49 }
0x2b27   :  { %3540 = vrcp.f32 %v2606_v50 }
0x2b31   :  { %v3541_v56 = vpop.eup %3540 }
0x2b32   :  { %v2621_v62 = vsub.f32 1.0, %v3541_v56  ;;  %v2627_v59 = vmul.f32 %v3541_v56, %v2526_v37 }
0x2b8a   :  { %v2612_v55 = vpop.permute.xlu0 %2611 }
0x2b8b   :  { %v2614_v54 = vmul.f32 %v3541_v56, %v2612_v55 }
0x2b8d   :  { %2616 = vrot.lane.b32.xlu1 %v2614_v54, %s3552_s21 }
0x2bff   :  { %v2617_v57 = vpop.permute.xlu1 %2616 }
0x2c00   :  { %v2619_v14 = vadd.f32 %v2617_v57, %v1807_v42 }
0x2c02   :  { %3542 = vtanh.f32 %v2619_v14 }
0x2c0c   :  { %v3543_v45 = vpop.eup %3542 }
0x2c0d   :  { %2623 = vrot.lane.b32.xlu0 %v3543_v45, %s3553_s22 }
0x2c7f   :  { %v2624_v28 = vpop.permute.xlu0 %2623 }
0x2c80   :  { %v2626_v58 = vmul.f32 %v2624_v28, %v2621_v62 }
0x2c82   :  { %v2628_v18 = vadd.f32 %v2627_v59, %v2626_v58 }
0x2c84   :  { %v2630_v63 = vmul.f32 0.70710677, %v2628_v18  ;;  %v2629_v41 = vmul.f32 0.5, %v2628_v18 }
0x2c86   :  { %v2631_v0 = vand.u32 2147483647, %v2630_v63  ;;  %vm2651_vm3 = vcmp.ge.f32.partialorder %v2630_v63, 0.0 }
0x2c88   :  { %v2632_v2 = vmul.f32 0.3275911, %v2631_v0  ;;  %v2645_v32 = vmul.f32 %v2631_v0, %v2631_v0 }
0x2c8a   :  { %v2633_v35 = vadd.f32 1.0, %v2632_v2  ;;  %v2646_v4 = vsub.f32 0.0, %v2645_v32 }
0x2c8c   :  { %3544 = vrcp.f32 %v2633_v35  ;;  %v2647_v9 = vmul.f32 1.442695, %v2646_v4 }
0x2c8e   :  { %3546 = vpow2.f32 %v2647_v9 }
0x2c96   :  { %v3545_v3 = vpop.eup %3544 }
0x2c97   :  { %v2636_v17 = vmul.f32 1.0614054, %v3545_v3 }
0x2c98   :  { %v3547_v43 = vpop.eup %3546 }
0x2c99   :  { %v2637_v15 = vadd.f32 -1.4531521, %v2636_v17 }
0x2c9b   :  { %v2638_v5 = vmul.f32 %v3545_v3, %v2637_v15 }
0x2c9d   :  { %v2639_v6 = vadd.f32 1.4214138, %v2638_v5 }
0x2c9f   :  { %v2640_v44 = vmul.f32 %v3545_v3, %v2639_v6 }
0x2ca1   :  { %v2641_v11 = vadd.f32 -0.28449672, %v2640_v44 }
0x2ca3   :  { %v2642_v51 = vmul.f32 %v3545_v3, %v2641_v11 }
0x2ca5   :  { %v2643_v10 = vadd.f32 0.2548296, %v2642_v51 }
0x2ca7   :  { %v2644_v39 = vmul.f32 %v3545_v3, %v2643_v10 }
0x2ca9   :  { %v2649_v26 = vmul.f32 %v3547_v43, %v2644_v39 }
0x2cab   :  { %v2650_v16 = vsub.f32 1.0, %v2649_v26 }
0x2cad   :  { %v2652_v12 = vsub.f32 0.0, %v2650_v16 }
0x2caf   :  { %v2653_v13 = vsel %vm2651_vm3, %v2650_v16, %v2652_v12 }
0x2cb0   :  { %v2654_v46 = vadd.f32 1.0, %v2653_v13 }
0x2cb2   :  { %v2655_v21 = vmul.f32 %v2654_v46, %v2629_v41 }
0x2cb4   :  { %2665 = vrot.lane.b32.xlu1 %v2655_v21, %s3553_s22 }
0x2d26   :  { %v2666_v23 = vpop.permute.xlu1 %2665 }
0x2d27   :  { %3279 = vmatmul.mubr.msk.f32.vlgmr.msra.gmra.mrb[44].mxu0 %vm176_vm1, %v2666_v23 }
0x2dfa   :  { %v2735_v1 = vpop.f32.mrb[44].mxu0 }
0x2dfb   :  { %v2736_v34 = vadd.f32 %v2735_v1, %v2663_v19  ;;  %v3280_v30 = vpop.f32.mrb[45].mxu0 }
0x2dfd   :  { %2739 = vst [vmem:[%s4156_s3] sm:$0xff] %v2736_v34 }

</bundles_post_ra>
